<compile_context>
chip_gen: v6e
topology: v6e:2x2x1
jax: 0.10.0
libtpu: 0.0.40
codegen_flags: <defaults>
</compile_context>

<pallas_src>
import math
import jax
import jax.numpy as jnp
from jax.experimental import pallas as pl
from jax.experimental.pallas import tpu as pltpu


def _rits_kernel(inv_den_ref,                       # SMEM (T,)  : 1/(sum(m_t)+1e-5)
                 v_ref, m_ref, d_ref,               # VMEM (B, T*D) batch-major
                 wdec_ref, bdec_ref,                # temporal decay: (D,H), (1,H)
                 wihxm_ref, bgate_ref,              # LSTM ih stacked [m;x]: (2D,4H), (1,4H)
                 whf_ref, breg_ref,                 # fused h weights: (H, Dp+4H), (1,D)
                 imp_ref, loss_ref):                # outputs: (B, T*D), (1,1)
    f32 = jnp.float32
    B = v_ref.shape[0]
    D, H = wdec_ref.shape
    T = v_ref.shape[1] // D
    H4 = 4 * H
    Dp = whf_ref.shape[1] - H4                      # lane-padded width of the W_reg tile

    # ---- load everything once (all tiny, resident in vregs/VMEM) ----
    v_all = v_ref[...]                              # (B, T*D)
    m_all = m_ref[...]
    d_all = d_ref[...]
    wdec = wdec_ref[...]                            # (D, H)
    wihxm = wihxm_ref[...]                          # (2D, 4H): rows = [m-part; x-part]
    wihx = wihxm[D:2 * D, :]                        # x_c part of W_ih, (D, 4H)
    whf = whf_ref[...]                              # (H, Dp + 4H)
    # hoisted broadcasts (JAX does not CSE broadcast_in_dim across the unroll)
    bdec_b = jnp.broadcast_to(bdec_ref[...], (B, H))
    bgate_b = jnp.broadcast_to(bgate_ref[...], (B, H4))
    breg_b = jnp.broadcast_to(breg_ref[...], (B, D))

    h = jnp.zeros((B, H), f32)
    c = jnp.zeros((B, H), f32)
    loss_vec = jnp.zeros((B, D), f32)
    xcs = []

    # ---- serial recurrence, fully unrolled (T is small and static) ----
    for t in range(T):
        lo = t * D
        x = v_all[:, lo:lo + D]                     # (B, D) 16-lane slices
        m = m_all[:, lo:lo + D]
        d = d_all[:, lo:lo + D]

        # recurrence-independent work (off the h/c dependence chain; the LLO
        # scheduler overlaps it with the serial chain across the unrolled block).
        gamma = jnp.exp(-jnp.maximum(
            jnp.dot(d, wdec, preferred_element_type=f32) + bdec_b, 0.0))    # (B, H)
        mx = m * x
        om = 1.0 - m
        mgate = jnp.dot(jnp.concatenate([m, mx], axis=1), wihxm,
                        preferred_element_type=f32) + bgate_b               # (B, 4H)

        # serial chain
        h = h * gamma
        hmat = jnp.dot(h, whf, preferred_element_type=f32)                  # (B, Dp+4H)
        x_h = hmat[:, :D] + breg_b                                          # W_reg tile first
        x_c = mx + om * x_h
        gates = (jnp.dot(om * x_h, wihx, preferred_element_type=f32)
                 + mgate + hmat[:, Dp:Dp + H4])                             # (B, 4H) [i,f,g,o]

        sig = jax.nn.sigmoid(gates)                 # full-vreg sigmoid, slice afterwards
        tnh = jnp.tanh(gates)                       # full-vreg tanh, slice afterwards
        i_g = sig[:, 0:H]
        f_g = sig[:, H:2 * H]
        g_g = tnh[:, 2 * H:3 * H]
        o_g = sig[:, 3 * H:4 * H]
        c = f_g * c + i_g * g_g
        h = o_g * jnp.tanh(c)

        # deferred loss: elementwise partials scaled by the exact per-step 1/den
        # (scalar SMEM read -> splat), single cross-lane reduce at the end.
        loss_vec = loss_vec + jnp.abs(x - x_h) * m * inv_den_ref[t]
        xcs.append(x_c)

    # one lane-dense (B, T*D) store -> one clean HBM DMA for the imputations.
    imp_ref[...] = jnp.concatenate(xcs, axis=1)
    loss_ref[...] = jnp.sum(loss_vec, keepdims=True)


def rits_i_forward(values, masks, deltas, params):
    """values/masks/deltas: (B, T, D) float32. Returns dict(loss, imputations)."""
    B0, T, D = values.shape
    H = params["W_dec"].shape[0]
    H4 = 4 * H

    # keep batch a multiple of 8 (sublane tile); padded rows have zero masks so
    # they contribute nothing to the loss and are dropped from the imputations.
    pad = (-B0) % 8
    if pad:
        p3 = ((0, pad), (0, 0), (0, 0))
        values = jnp.pad(values, p3)
        masks = jnp.pad(masks, p3)
        deltas = jnp.pad(deltas, p3)
    B = B0 + pad

    # batch-major (B, T*D) views: pure reshapes, no transposes.
    v_bm = values.reshape(B, T * D)
    m_bm = masks.reshape(B, T * D)
    d_bm = deltas.reshape(B, T * D)
    # exact per-timestep loss denominators, computed once in the wrapper.
    inv_den = 1.0 / (jnp.sum(masks, axis=(0, 2)) + 1e-5)          # (T,)

    # weights (trace-time reshapes/concats only)
    wdec = params["W_dec"].T                                      # (D, H)
    bdec = params["b_dec"].reshape(1, H)
    W_ih = params["W_ih"]                                         # (4H, 2D), input = [x_c, m]
    wihx = W_ih[:, :D].T                                          # (D, 4H)  x_c part
    wihm = W_ih[:, D:].T                                          # (D, 4H)  mask part
    wihxm = jnp.concatenate([wihm, wihx], axis=0)                 # (2D, 4H) for [m | m*x]
    bgate = (params["b_ih"] + params["b_hh"]).reshape(1, H4)
    # fused h weights: W_reg tile FIRST (lane-padded to 128) so the serially
    # dependent regression result drains from the first MXU result tile.
    Dp = ((D + 127) // 128) * 128
    whf = jnp.concatenate(
        [params["W_reg"].T, jnp.zeros((H, Dp - D), jnp.float32), params["W_hh"].T],
        axis=1)                                                   # (H, Dp + 4H)
    breg = params["b_reg"].reshape(1, D)

    vmem = pl.BlockSpec(memory_space=pltpu.MemorySpace.VMEM)
    smem = pl.BlockSpec(memory_space=pltpu.MemorySpace.SMEM)

    imp_flat, loss = pl.pallas_call(
        _rits_kernel,
        out_shape=(
            jax.ShapeDtypeStruct((B, T * D), jnp.float32),        # lane-dense imputations
            jax.ShapeDtypeStruct((1, 1), jnp.float32),            # loss scalar
        ),
        in_specs=[smem, vmem, vmem, vmem, vmem, vmem, vmem, vmem, vmem, vmem],
        out_specs=(vmem, vmem),
    )(inv_den, v_bm, m_bm, d_bm, wdec, bdec, wihxm, bgate, whf, breg)

    imputations = imp_flat.reshape(B, T, D)[:B0]                  # batch-major: no transpose
    return {"loss": loss[0, 0], "imputations": imputations}


def rits_i_reference(values, masks, deltas, params):
    """Pure-JAX reference mirroring the PyTorch forward."""
    B, T, D = values.shape
    H = params["W_dec"].shape[0]
    h = jnp.zeros((B, H), jnp.float32)
    c = jnp.zeros((B, H), jnp.float32)
    x_loss = 0.0
    imps = []
    for t in range(T):
        x, m, d = values[:, t, :], masks[:, t, :], deltas[:, t, :]
        gamma = jnp.exp(-jnp.maximum(d @ params["W_dec"].T + params["b_dec"], 0.0))
        h = h * gamma
        x_h = h @ params["W_reg"].T + params["b_reg"]
        x_c = m * x + (1.0 - m) * x_h
        x_loss = x_loss + jnp.sum(jnp.abs(x - x_h) * m) / (jnp.sum(m) + 1e-5)
        inp = jnp.concatenate([x_c, m], axis=1)
        gates = inp @ params["W_ih"].T + params["b_ih"] + h @ params["W_hh"].T + params["b_hh"]
        i_g = jax.nn.sigmoid(gates[:, 0:H])
        f_g = jax.nn.sigmoid(gates[:, H:2 * H])
        g_g = jnp.tanh(gates[:, 2 * H:3 * H])
        o_g = jax.nn.sigmoid(gates[:, 3 * H:4 * H])
        c = f_g * c + i_g * g_g
        h = o_g * jnp.tanh(c)
        imps.append(x_c[:, None, :])
    return {"loss": x_loss, "imputations": jnp.concatenate(imps, axis=1)}


def make_params(key, D, H):
    ks = jax.random.split(key, 8)
    u = lambda k, shape, s: jax.random.uniform(k, shape, jnp.float32, -s, s)
    sd = 1.0 / math.sqrt(H)
    return {
        "W_dec": u(ks[0], (H, D), sd),
        "b_dec": u(ks[1], (H,), sd),
        "W_reg": u(ks[2], (D, H), sd),
        "b_reg": u(ks[3], (D,), sd),
        "W_ih": u(ks[4], (4 * H, 2 * D), sd),
        "b_ih": u(ks[5], (4 * H,), sd),
        "W_hh": u(ks[6], (4 * H, H), sd),
        "b_hh": u(ks[7], (4 * H,), sd),
    }


if __name__ == "__main__":
    B, T, D, H = 8, 8, 16, 32  # batch, seq_len, element_num, rnn_hid_size
    key = jax.random.PRNGKey(0)
    k_v, k_m, k_d, k_p = jax.random.split(key, 4)

    values = jax.random.normal(k_v, (B, T, D), jnp.float32)
    masks = jax.random.bernoulli(k_m, 0.7, (B, T, D)).astype(jnp.float32)
    deltas = jax.random.uniform(k_d, (B, T, D), jnp.float32, 0.0, 3.0)
    params = make_params(k_p, D, H)

    forward = jax.jit(rits_i_forward)
    out = forward(values, masks, deltas, params)
    jax.block_until_ready(out)

    ref = rits_i_reference(values, masks, deltas, params)
    assert jnp.allclose(out["loss"], ref["loss"], atol=1e-4, rtol=1e-4)
    assert jnp.allclose(out["imputations"], ref["imputations"], atol=1e-4, rtol=1e-4)

    print("KERNEL_OK")
</pallas_src>

<mosaic_0001>
module attributes {stable_mosaic.version = 11 : i64} {
  func.func @_rits_kernel(%arg0: memref<8xf32, #tpu.memory_space<smem>>, %arg1: memref<8x128xf32, #tpu.memory_space<vmem>>, %arg2: memref<8x128xf32, #tpu.memory_space<vmem>>, %arg3: memref<8x128xf32, #tpu.memory_space<vmem>>, %arg4: memref<16x32xf32, #tpu.memory_space<vmem>>, %arg5: memref<1x32xf32, #tpu.memory_space<vmem>>, %arg6: memref<32x128xf32, #tpu.memory_space<vmem>>, %arg7: memref<1x128xf32, #tpu.memory_space<vmem>>, %arg8: memref<32x256xf32, #tpu.memory_space<vmem>>, %arg9: memref<1x16xf32, #tpu.memory_space<vmem>>, %arg10: memref<8x128xf32, #tpu.memory_space<vmem>>, %arg11: memref<1x1xf32, #tpu.memory_space<vmem>>) attributes {dimension_semantics = [], scalar_prefetch = 0 : i64, scratch_operands = 0 : i64, tpu.core_type = #tpu.core_type<tc>} {
    %c0 = arith.constant 0 : index
    %c0_0 = arith.constant 0 : index
    %0 = vector.load %arg1[%c0, %c0_0] : memref<8x128xf32, #tpu.memory_space<vmem>>, vector<8x128xf32>
    %c0_1 = arith.constant 0 : index
    %c0_2 = arith.constant 0 : index
    %1 = vector.load %arg2[%c0_1, %c0_2] : memref<8x128xf32, #tpu.memory_space<vmem>>, vector<8x128xf32>
    %c0_3 = arith.constant 0 : index
    %c0_4 = arith.constant 0 : index
    %2 = vector.load %arg3[%c0_3, %c0_4] : memref<8x128xf32, #tpu.memory_space<vmem>>, vector<8x128xf32>
    %c0_5 = arith.constant 0 : index
    %c0_6 = arith.constant 0 : index
    %3 = vector.load %arg4[%c0_5, %c0_6] : memref<16x32xf32, #tpu.memory_space<vmem>>, vector<16x32xf32>
    %c0_7 = arith.constant 0 : index
    %c0_8 = arith.constant 0 : index
    %4 = vector.load %arg6[%c0_7, %c0_8] : memref<32x128xf32, #tpu.memory_space<vmem>>, vector<32x128xf32>
    %5 = vector.extract_strided_slice %4 {offsets = [16, 0], sizes = [16, 128], strides = [1, 1]} : vector<32x128xf32> to vector<16x128xf32>
    %c0_9 = arith.constant 0 : index
    %c0_10 = arith.constant 0 : index
    %6 = vector.load %arg8[%c0_9, %c0_10] : memref<32x256xf32, #tpu.memory_space<vmem>>, vector<32x256xf32>
    %c0_11 = arith.constant 0 : index
    %c0_12 = arith.constant 0 : index
    %7 = vector.load %arg5[%c0_11, %c0_12] : memref<1x32xf32, #tpu.memory_space<vmem>>, vector<1x32xf32>
    %8 = vector.shape_cast %7 : vector<1x32xf32> to vector<1x32xf32>
    %9 = vector.broadcast %8 : vector<1x32xf32> to vector<8x32xf32>
    %c0_13 = arith.constant 0 : index
    %c0_14 = arith.constant 0 : index
    %10 = vector.load %arg7[%c0_13, %c0_14] : memref<1x128xf32, #tpu.memory_space<vmem>>, vector<1x128xf32>
    %11 = vector.shape_cast %10 : vector<1x128xf32> to vector<1x128xf32>
    %12 = vector.broadcast %11 : vector<1x128xf32> to vector<8x128xf32>
    %c0_15 = arith.constant 0 : index
    %c0_16 = arith.constant 0 : index
    %13 = vector.load %arg9[%c0_15, %c0_16] : memref<1x16xf32, #tpu.memory_space<vmem>>, vector<1x16xf32>
    %14 = vector.shape_cast %13 : vector<1x16xf32> to vector<1x16xf32>
    %15 = vector.broadcast %14 : vector<1x16xf32> to vector<8x16xf32>
    %cst = arith.constant 0.000000e+00 : f32
    %16 = vector.broadcast %cst : f32 to vector<8x32xf32>
    %cst_17 = arith.constant 0.000000e+00 : f32
    %17 = vector.broadcast %cst_17 : f32 to vector<8x32xf32>
    %cst_18 = arith.constant 0.000000e+00 : f32
    %18 = vector.broadcast %cst_18 : f32 to vector<8x16xf32>
    %19 = vector.extract_strided_slice %0 {offsets = [0, 0], sizes = [8, 16], strides = [1, 1]} : vector<8x128xf32> to vector<8x16xf32>
    %20 = vector.extract_strided_slice %1 {offsets = [0, 0], sizes = [8, 16], strides = [1, 1]} : vector<8x128xf32> to vector<8x16xf32>
    %21 = vector.extract_strided_slice %2 {offsets = [0, 0], sizes = [8, 16], strides = [1, 1]} : vector<8x128xf32> to vector<8x16xf32>
    %cst_19 = arith.constant dense<0.000000e+00> : vector<8x32xf32>
    %22 = tpu.matmul %21, %3, %cst_19 {dimension_numbers = #tpu.dot_dimension_numbers<[1], [0], [0], [1], [0, 0, 1, 1], [], []>} : vector<8x16xf32>, vector<16x32xf32>, vector<8x32xf32> -> vector<8x32xf32>
    %23 = arith.addf %22, %9 : vector<8x32xf32>
    %cst_20 = arith.constant 0.000000e+00 : f32
    %24 = vector.broadcast %cst_20 : f32 to vector<8x32xf32>
    %25 = arith.maximumf %23, %24 : vector<8x32xf32>
    %cst_21 = arith.constant 0.000000e+00 : f32
    %26 = vector.broadcast %cst_21 : f32 to vector<8x32xf32>
    %27 = arith.subf %26, %25 : vector<8x32xf32>
    %28 = math.exp %27 : vector<8x32xf32>
    %29 = arith.mulf %20, %19 : vector<8x16xf32>
    %cst_22 = arith.constant 1.000000e+00 : f32
    %30 = vector.broadcast %cst_22 : f32 to vector<8x16xf32>
    %31 = arith.subf %30, %20 : vector<8x16xf32>
    %32 = tpu.concatenate %20, %29 in 1 : vector<8x16xf32>, vector<8x16xf32> -> vector<8x32xf32>
    %cst_23 = arith.constant dense<0.000000e+00> : vector<8x128xf32>
    %33 = tpu.matmul %32, %4, %cst_23 {dimension_numbers = #tpu.dot_dimension_numbers<[1], [0], [0], [1], [0, 0, 1, 1], [], []>} : vector<8x32xf32>, vector<32x128xf32>, vector<8x128xf32> -> vector<8x128xf32>
    %34 = arith.addf %33, %12 : vector<8x128xf32>
    %35 = arith.mulf %16, %28 : vector<8x32xf32>
    %cst_24 = arith.constant dense<0.000000e+00> : vector<8x256xf32>
    %36 = tpu.matmul %35, %6, %cst_24 {dimension_numbers = #tpu.dot_dimension_numbers<[1], [0], [0], [1], [0, 0, 1, 1], [], []>} : vector<8x32xf32>, vector<32x256xf32>, vector<8x256xf32> -> vector<8x256xf32>
    %37 = vector.extract_strided_slice %36 {offsets = [0, 0], sizes = [8, 16], strides = [1, 1]} : vector<8x256xf32> to vector<8x16xf32>
    %38 = arith.addf %37, %15 : vector<8x16xf32>
    %39 = arith.mulf %31, %38 : vector<8x16xf32>
    %40 = arith.addf %29, %39 : vector<8x16xf32>
    %41 = arith.mulf %31, %38 : vector<8x16xf32>
    %cst_25 = arith.constant dense<0.000000e+00> : vector<8x128xf32>
    %42 = tpu.matmul %41, %5, %cst_25 {dimension_numbers = #tpu.dot_dimension_numbers<[1], [0], [0], [1], [0, 0, 1, 1], [], []>} : vector<8x16xf32>, vector<16x128xf32>, vector<8x128xf32> -> vector<8x128xf32>
    %43 = arith.addf %42, %34 : vector<8x128xf32>
    %44 = vector.extract_strided_slice %36 {offsets = [0, 128], sizes = [8, 128], strides = [1, 1]} : vector<8x256xf32> to vector<8x128xf32>
    %45 = arith.addf %43, %44 : vector<8x128xf32>
    %46 = arith.negf %45 : vector<8x128xf32>
    %47 = math.exp %46 : vector<8x128xf32>
    %cst_26 = arith.constant 1.000000e+00 : f32
    %48 = vector.broadcast %cst_26 : f32 to vector<8x128xf32>
    %49 = arith.addf %48, %47 : vector<8x128xf32>
    %50 = arith.divf %48, %49 : vector<8x128xf32>
    %51 = math.tanh %45 : vector<8x128xf32>
    %52 = vector.extract_strided_slice %50 {offsets = [0, 0], sizes = [8, 32], strides = [1, 1]} : vector<8x128xf32> to vector<8x32xf32>
    %53 = vector.extract_strided_slice %50 {offsets = [0, 32], sizes = [8, 32], strides = [1, 1]} : vector<8x128xf32> to vector<8x32xf32>
    %54 = vector.extract_strided_slice %51 {offsets = [0, 64], sizes = [8, 32], strides = [1, 1]} : vector<8x128xf32> to vector<8x32xf32>
    %55 = vector.extract_strided_slice %50 {offsets = [0, 96], sizes = [8, 32], strides = [1, 1]} : vector<8x128xf32> to vector<8x32xf32>
    %56 = arith.mulf %53, %17 : vector<8x32xf32>
    %57 = arith.mulf %52, %54 : vector<8x32xf32>
    %58 = arith.addf %56, %57 : vector<8x32xf32>
    %59 = math.tanh %58 : vector<8x32xf32>
    %60 = arith.mulf %55, %59 : vector<8x32xf32>
    %61 = arith.subf %19, %38 : vector<8x16xf32>
    %62 = math.absf %61 : vector<8x16xf32>
    %63 = arith.mulf %62, %20 : vector<8x16xf32>
    %c0_27 = arith.constant 0 : index
    %64 = memref.load %arg0[%c0_27] : memref<8xf32, #tpu.memory_space<smem>>
    %65 = vector.broadcast %64 : f32 to vector<8x16xf32>
    %66 = arith.mulf %63, %65 : vector<8x16xf32>
    %67 = arith.addf %18, %66 : vector<8x16xf32>
    %68 = vector.extract_strided_slice %0 {offsets = [0, 16], sizes = [8, 16], strides = [1, 1]} : vector<8x128xf32> to vector<8x16xf32>
    %69 = vector.extract_strided_slice %1 {offsets = [0, 16], sizes = [8, 16], strides = [1, 1]} : vector<8x128xf32> to vector<8x16xf32>
    %70 = vector.extract_strided_slice %2 {offsets = [0, 16], sizes = [8, 16], strides = [1, 1]} : vector<8x128xf32> to vector<8x16xf32>
    %cst_28 = arith.constant dense<0.000000e+00> : vector<8x32xf32>
    %71 = tpu.matmul %70, %3, %cst_28 {dimension_numbers = #tpu.dot_dimension_numbers<[1], [0], [0], [1], [0, 0, 1, 1], [], []>} : vector<8x16xf32>, vector<16x32xf32>, vector<8x32xf32> -> vector<8x32xf32>
    %72 = arith.addf %71, %9 : vector<8x32xf32>
    %cst_29 = arith.constant 0.000000e+00 : f32
    %73 = vector.broadcast %cst_29 : f32 to vector<8x32xf32>
    %74 = arith.maximumf %72, %73 : vector<8x32xf32>
    %cst_30 = arith.constant 0.000000e+00 : f32
    %75 = vector.broadcast %cst_30 : f32 to vector<8x32xf32>
    %76 = arith.subf %75, %74 : vector<8x32xf32>
    %77 = math.exp %76 : vector<8x32xf32>
    %78 = arith.mulf %69, %68 : vector<8x16xf32>
    %cst_31 = arith.constant 1.000000e+00 : f32
    %79 = vector.broadcast %cst_31 : f32 to vector<8x16xf32>
    %80 = arith.subf %79, %69 : vector<8x16xf32>
    %81 = tpu.concatenate %69, %78 in 1 : vector<8x16xf32>, vector<8x16xf32> -> vector<8x32xf32>
    %cst_32 = arith.constant dense<0.000000e+00> : vector<8x128xf32>
    %82 = tpu.matmul %81, %4, %cst_32 {dimension_numbers = #tpu.dot_dimension_numbers<[1], [0], [0], [1], [0, 0, 1, 1], [], []>} : vector<8x32xf32>, vector<32x128xf32>, vector<8x128xf32> -> vector<8x128xf32>
    %83 = arith.addf %82, %12 : vector<8x128xf32>
    %84 = arith.mulf %60, %77 : vector<8x32xf32>
    %cst_33 = arith.constant dense<0.000000e+00> : vector<8x256xf32>
    %85 = tpu.matmul %84, %6, %cst_33 {dimension_numbers = #tpu.dot_dimension_numbers<[1], [0], [0], [1], [0, 0, 1, 1], [], []>} : vector<8x32xf32>, vector<32x256xf32>, vector<8x256xf32> -> vector<8x256xf32>
    %86 = vector.extract_strided_slice %85 {offsets = [0, 0], sizes = [8, 16], strides = [1, 1]} : vector<8x256xf32> to vector<8x16xf32>
    %87 = arith.addf %86, %15 : vector<8x16xf32>
    %88 = arith.mulf %80, %87 : vector<8x16xf32>
    %89 = arith.addf %78, %88 : vector<8x16xf32>
    %90 = arith.mulf %80, %87 : vector<8x16xf32>
    %cst_34 = arith.constant dense<0.000000e+00> : vector<8x128xf32>
    %91 = tpu.matmul %90, %5, %cst_34 {dimension_numbers = #tpu.dot_dimension_numbers<[1], [0], [0], [1], [0, 0, 1, 1], [], []>} : vector<8x16xf32>, vector<16x128xf32>, vector<8x128xf32> -> vector<8x128xf32>
    %92 = arith.addf %91, %83 : vector<8x128xf32>
    %93 = vector.extract_strided_slice %85 {offsets = [0, 128], sizes = [8, 128], strides = [1, 1]} : vector<8x256xf32> to vector<8x128xf32>
    %94 = arith.addf %92, %93 : vector<8x128xf32>
    %95 = arith.negf %94 : vector<8x128xf32>
    %96 = math.exp %95 : vector<8x128xf32>
    %cst_35 = arith.constant 1.000000e+00 : f32
    %97 = vector.broadcast %cst_35 : f32 to vector<8x128xf32>
    %98 = arith.addf %97, %96 : vector<8x128xf32>
    %99 = arith.divf %97, %98 : vector<8x128xf32>
    %100 = math.tanh %94 : vector<8x128xf32>
    %101 = vector.extract_strided_slice %99 {offsets = [0, 0], sizes = [8, 32], strides = [1, 1]} : vector<8x128xf32> to vector<8x32xf32>
    %102 = vector.extract_strided_slice %99 {offsets = [0, 32], sizes = [8, 32], strides = [1, 1]} : vector<8x128xf32> to vector<8x32xf32>
    %103 = vector.extract_strided_slice %100 {offsets = [0, 64], sizes = [8, 32], strides = [1, 1]} : vector<8x128xf32> to vector<8x32xf32>
    %104 = vector.extract_strided_slice %99 {offsets = [0, 96], sizes = [8, 32], strides = [1, 1]} : vector<8x128xf32> to vector<8x32xf32>
    %105 = arith.mulf %102, %58 : vector<8x32xf32>
    %106 = arith.mulf %101, %103 : vector<8x32xf32>
    %107 = arith.addf %105, %106 : vector<8x32xf32>
    %108 = math.tanh %107 : vector<8x32xf32>
    %109 = arith.mulf %104, %108 : vector<8x32xf32>
    %110 = arith.subf %68, %87 : vector<8x16xf32>
    %111 = math.absf %110 : vector<8x16xf32>
    %112 = arith.mulf %111, %69 : vector<8x16xf32>
    %c1 = arith.constant 1 : index
    %113 = memref.load %arg0[%c1] : memref<8xf32, #tpu.memory_space<smem>>
    %114 = vector.broadcast %113 : f32 to vector<8x16xf32>
    %115 = arith.mulf %112, %114 : vector<8x16xf32>
    %116 = arith.addf %67, %115 : vector<8x16xf32>
    %117 = vector.extract_strided_slice %0 {offsets = [0, 32], sizes = [8, 16], strides = [1, 1]} : vector<8x128xf32> to vector<8x16xf32>
    %118 = vector.extract_strided_slice %1 {offsets = [0, 32], sizes = [8, 16], strides = [1, 1]} : vector<8x128xf32> to vector<8x16xf32>
    %119 = vector.extract_strided_slice %2 {offsets = [0, 32], sizes = [8, 16], strides = [1, 1]} : vector<8x128xf32> to vector<8x16xf32>
    %cst_36 = arith.constant dense<0.000000e+00> : vector<8x32xf32>
    %120 = tpu.matmul %119, %3, %cst_36 {dimension_numbers = #tpu.dot_dimension_numbers<[1], [0], [0], [1], [0, 0, 1, 1], [], []>} : vector<8x16xf32>, vector<16x32xf32>, vector<8x32xf32> -> vector<8x32xf32>
    %121 = arith.addf %120, %9 : vector<8x32xf32>
    %cst_37 = arith.constant 0.000000e+00 : f32
    %122 = vector.broadcast %cst_37 : f32 to vector<8x32xf32>
    %123 = arith.maximumf %121, %122 : vector<8x32xf32>
    %cst_38 = arith.constant 0.000000e+00 : f32
    %124 = vector.broadcast %cst_38 : f32 to vector<8x32xf32>
    %125 = arith.subf %124, %123 : vector<8x32xf32>
    %126 = math.exp %125 : vector<8x32xf32>
    %127 = arith.mulf %118, %117 : vector<8x16xf32>
    %cst_39 = arith.constant 1.000000e+00 : f32
    %128 = vector.broadcast %cst_39 : f32 to vector<8x16xf32>
    %129 = arith.subf %128, %118 : vector<8x16xf32>
    %130 = tpu.concatenate %118, %127 in 1 : vector<8x16xf32>, vector<8x16xf32> -> vector<8x32xf32>
    %cst_40 = arith.constant dense<0.000000e+00> : vector<8x128xf32>
    %131 = tpu.matmul %130, %4, %cst_40 {dimension_numbers = #tpu.dot_dimension_numbers<[1], [0], [0], [1], [0, 0, 1, 1], [], []>} : vector<8x32xf32>, vector<32x128xf32>, vector<8x128xf32> -> vector<8x128xf32>
    %132 = arith.addf %131, %12 : vector<8x128xf32>
    %133 = arith.mulf %109, %126 : vector<8x32xf32>
    %cst_41 = arith.constant dense<0.000000e+00> : vector<8x256xf32>
    %134 = tpu.matmul %133, %6, %cst_41 {dimension_numbers = #tpu.dot_dimension_numbers<[1], [0], [0], [1], [0, 0, 1, 1], [], []>} : vector<8x32xf32>, vector<32x256xf32>, vector<8x256xf32> -> vector<8x256xf32>
    %135 = vector.extract_strided_slice %134 {offsets = [0, 0], sizes = [8, 16], strides = [1, 1]} : vector<8x256xf32> to vector<8x16xf32>
    %136 = arith.addf %135, %15 : vector<8x16xf32>
    %137 = arith.mulf %129, %136 : vector<8x16xf32>
    %138 = arith.addf %127, %137 : vector<8x16xf32>
    %139 = arith.mulf %129, %136 : vector<8x16xf32>
    %cst_42 = arith.constant dense<0.000000e+00> : vector<8x128xf32>
    %140 = tpu.matmul %139, %5, %cst_42 {dimension_numbers = #tpu.dot_dimension_numbers<[1], [0], [0], [1], [0, 0, 1, 1], [], []>} : vector<8x16xf32>, vector<16x128xf32>, vector<8x128xf32> -> vector<8x128xf32>
    %141 = arith.addf %140, %132 : vector<8x128xf32>
    %142 = vector.extract_strided_slice %134 {offsets = [0, 128], sizes = [8, 128], strides = [1, 1]} : vector<8x256xf32> to vector<8x128xf32>
    %143 = arith.addf %141, %142 : vector<8x128xf32>
    %144 = arith.negf %143 : vector<8x128xf32>
    %145 = math.exp %144 : vector<8x128xf32>
    %cst_43 = arith.constant 1.000000e+00 : f32
    %146 = vector.broadcast %cst_43 : f32 to vector<8x128xf32>
    %147 = arith.addf %146, %145 : vector<8x128xf32>
    %148 = arith.divf %146, %147 : vector<8x128xf32>
    %149 = math.tanh %143 : vector<8x128xf32>
    %150 = vector.extract_strided_slice %148 {offsets = [0, 0], sizes = [8, 32], strides = [1, 1]} : vector<8x128xf32> to vector<8x32xf32>
    %151 = vector.extract_strided_slice %148 {offsets = [0, 32], sizes = [8, 32], strides = [1, 1]} : vector<8x128xf32> to vector<8x32xf32>
    %152 = vector.extract_strided_slice %149 {offsets = [0, 64], sizes = [8, 32], strides = [1, 1]} : vector<8x128xf32> to vector<8x32xf32>
    %153 = vector.extract_strided_slice %148 {offsets = [0, 96], sizes = [8, 32], strides = [1, 1]} : vector<8x128xf32> to vector<8x32xf32>
    %154 = arith.mulf %151, %107 : vector<8x32xf32>
    %155 = arith.mulf %150, %152 : vector<8x32xf32>
    %156 = arith.addf %154, %155 : vector<8x32xf32>
    %157 = math.tanh %156 : vector<8x32xf32>
    %158 = arith.mulf %153, %157 : vector<8x32xf32>
    %159 = arith.subf %117, %136 : vector<8x16xf32>
    %160 = math.absf %159 : vector<8x16xf32>
    %161 = arith.mulf %160, %118 : vector<8x16xf32>
    %c2 = arith.constant 2 : index
    %162 = memref.load %arg0[%c2] : memref<8xf32, #tpu.memory_space<smem>>
    %163 = vector.broadcast %162 : f32 to vector<8x16xf32>
    %164 = arith.mulf %161, %163 : vector<8x16xf32>
    %165 = arith.addf %116, %164 : vector<8x16xf32>
    %166 = vector.extract_strided_slice %0 {offsets = [0, 48], sizes = [8, 16], strides = [1, 1]} : vector<8x128xf32> to vector<8x16xf32>
    %167 = vector.extract_strided_slice %1 {offsets = [0, 48], sizes = [8, 16], strides = [1, 1]} : vector<8x128xf32> to vector<8x16xf32>
    %168 = vector.extract_strided_slice %2 {offsets = [0, 48], sizes = [8, 16], strides = [1, 1]} : vector<8x128xf32> to vector<8x16xf32>
    %cst_44 = arith.constant dense<0.000000e+00> : vector<8x32xf32>
    %169 = tpu.matmul %168, %3, %cst_44 {dimension_numbers = #tpu.dot_dimension_numbers<[1], [0], [0], [1], [0, 0, 1, 1], [], []>} : vector<8x16xf32>, vector<16x32xf32>, vector<8x32xf32> -> vector<8x32xf32>
    %170 = arith.addf %169, %9 : vector<8x32xf32>
    %cst_45 = arith.constant 0.000000e+00 : f32
    %171 = vector.broadcast %cst_45 : f32 to vector<8x32xf32>
    %172 = arith.maximumf %170, %171 : vector<8x32xf32>
    %cst_46 = arith.constant 0.000000e+00 : f32
    %173 = vector.broadcast %cst_46 : f32 to vector<8x32xf32>
    %174 = arith.subf %173, %172 : vector<8x32xf32>
    %175 = math.exp %174 : vector<8x32xf32>
    %176 = arith.mulf %167, %166 : vector<8x16xf32>
    %cst_47 = arith.constant 1.000000e+00 : f32
    %177 = vector.broadcast %cst_47 : f32 to vector<8x16xf32>
    %178 = arith.subf %177, %167 : vector<8x16xf32>
    %179 = tpu.concatenate %167, %176 in 1 : vector<8x16xf32>, vector<8x16xf32> -> vector<8x32xf32>
    %cst_48 = arith.constant dense<0.000000e+00> : vector<8x128xf32>
    %180 = tpu.matmul %179, %4, %cst_48 {dimension_numbers = #tpu.dot_dimension_numbers<[1], [0], [0], [1], [0, 0, 1, 1], [], []>} : vector<8x32xf32>, vector<32x128xf32>, vector<8x128xf32> -> vector<8x128xf32>
    %181 = arith.addf %180, %12 : vector<8x128xf32>
    %182 = arith.mulf %158, %175 : vector<8x32xf32>
    %cst_49 = arith.constant dense<0.000000e+00> : vector<8x256xf32>
    %183 = tpu.matmul %182, %6, %cst_49 {dimension_numbers = #tpu.dot_dimension_numbers<[1], [0], [0], [1], [0, 0, 1, 1], [], []>} : vector<8x32xf32>, vector<32x256xf32>, vector<8x256xf32> -> vector<8x256xf32>
    %184 = vector.extract_strided_slice %183 {offsets = [0, 0], sizes = [8, 16], strides = [1, 1]} : vector<8x256xf32> to vector<8x16xf32>
    %185 = arith.addf %184, %15 : vector<8x16xf32>
    %186 = arith.mulf %178, %185 : vector<8x16xf32>
    %187 = arith.addf %176, %186 : vector<8x16xf32>
    %188 = arith.mulf %178, %185 : vector<8x16xf32>
    %cst_50 = arith.constant dense<0.000000e+00> : vector<8x128xf32>
    %189 = tpu.matmul %188, %5, %cst_50 {dimension_numbers = #tpu.dot_dimension_numbers<[1], [0], [0], [1], [0, 0, 1, 1], [], []>} : vector<8x16xf32>, vector<16x128xf32>, vector<8x128xf32> -> vector<8x128xf32>
    %190 = arith.addf %189, %181 : vector<8x128xf32>
    %191 = vector.extract_strided_slice %183 {offsets = [0, 128], sizes = [8, 128], strides = [1, 1]} : vector<8x256xf32> to vector<8x128xf32>
    %192 = arith.addf %190, %191 : vector<8x128xf32>
    %193 = arith.negf %192 : vector<8x128xf32>
    %194 = math.exp %193 : vector<8x128xf32>
    %cst_51 = arith.constant 1.000000e+00 : f32
    %195 = vector.broadcast %cst_51 : f32 to vector<8x128xf32>
    %196 = arith.addf %195, %194 : vector<8x128xf32>
    %197 = arith.divf %195, %196 : vector<8x128xf32>
    %198 = math.tanh %192 : vector<8x128xf32>
    %199 = vector.extract_strided_slice %197 {offsets = [0, 0], sizes = [8, 32], strides = [1, 1]} : vector<8x128xf32> to vector<8x32xf32>
    %200 = vector.extract_strided_slice %197 {offsets = [0, 32], sizes = [8, 32], strides = [1, 1]} : vector<8x128xf32> to vector<8x32xf32>
    %201 = vector.extract_strided_slice %198 {offsets = [0, 64], sizes = [8, 32], strides = [1, 1]} : vector<8x128xf32> to vector<8x32xf32>
    %202 = vector.extract_strided_slice %197 {offsets = [0, 96], sizes = [8, 32], strides = [1, 1]} : vector<8x128xf32> to vector<8x32xf32>
    %203 = arith.mulf %200, %156 : vector<8x32xf32>
    %204 = arith.mulf %199, %201 : vector<8x32xf32>
    %205 = arith.addf %203, %204 : vector<8x32xf32>
    %206 = math.tanh %205 : vector<8x32xf32>
    %207 = arith.mulf %202, %206 : vector<8x32xf32>
    %208 = arith.subf %166, %185 : vector<8x16xf32>
    %209 = math.absf %208 : vector<8x16xf32>
    %210 = arith.mulf %209, %167 : vector<8x16xf32>
    %c3 = arith.constant 3 : index
    %211 = memref.load %arg0[%c3] : memref<8xf32, #tpu.memory_space<smem>>
    %212 = vector.broadcast %211 : f32 to vector<8x16xf32>
    %213 = arith.mulf %210, %212 : vector<8x16xf32>
    %214 = arith.addf %165, %213 : vector<8x16xf32>
    %215 = vector.extract_strided_slice %0 {offsets = [0, 64], sizes = [8, 16], strides = [1, 1]} : vector<8x128xf32> to vector<8x16xf32>
    %216 = vector.extract_strided_slice %1 {offsets = [0, 64], sizes = [8, 16], strides = [1, 1]} : vector<8x128xf32> to vector<8x16xf32>
    %217 = vector.extract_strided_slice %2 {offsets = [0, 64], sizes = [8, 16], strides = [1, 1]} : vector<8x128xf32> to vector<8x16xf32>
    %cst_52 = arith.constant dense<0.000000e+00> : vector<8x32xf32>
    %218 = tpu.matmul %217, %3, %cst_52 {dimension_numbers = #tpu.dot_dimension_numbers<[1], [0], [0], [1], [0, 0, 1, 1], [], []>} : vector<8x16xf32>, vector<16x32xf32>, vector<8x32xf32> -> vector<8x32xf32>
    %219 = arith.addf %218, %9 : vector<8x32xf32>
    %cst_53 = arith.constant 0.000000e+00 : f32
    %220 = vector.broadcast %cst_53 : f32 to vector<8x32xf32>
    %221 = arith.maximumf %219, %220 : vector<8x32xf32>
    %cst_54 = arith.constant 0.000000e+00 : f32
    %222 = vector.broadcast %cst_54 : f32 to vector<8x32xf32>
    %223 = arith.subf %222, %221 : vector<8x32xf32>
    %224 = math.exp %223 : vector<8x32xf32>
    %225 = arith.mulf %216, %215 : vector<8x16xf32>
    %cst_55 = arith.constant 1.000000e+00 : f32
    %226 = vector.broadcast %cst_55 : f32 to vector<8x16xf32>
    %227 = arith.subf %226, %216 : vector<8x16xf32>
    %228 = tpu.concatenate %216, %225 in 1 : vector<8x16xf32>, vector<8x16xf32> -> vector<8x32xf32>
    %cst_56 = arith.constant dense<0.000000e+00> : vector<8x128xf32>
    %229 = tpu.matmul %228, %4, %cst_56 {dimension_numbers = #tpu.dot_dimension_numbers<[1], [0], [0], [1], [0, 0, 1, 1], [], []>} : vector<8x32xf32>, vector<32x128xf32>, vector<8x128xf32> -> vector<8x128xf32>
    %230 = arith.addf %229, %12 : vector<8x128xf32>
    %231 = arith.mulf %207, %224 : vector<8x32xf32>
    %cst_57 = arith.constant dense<0.000000e+00> : vector<8x256xf32>
    %232 = tpu.matmul %231, %6, %cst_57 {dimension_numbers = #tpu.dot_dimension_numbers<[1], [0], [0], [1], [0, 0, 1, 1], [], []>} : vector<8x32xf32>, vector<32x256xf32>, vector<8x256xf32> -> vector<8x256xf32>
    %233 = vector.extract_strided_slice %232 {offsets = [0, 0], sizes = [8, 16], strides = [1, 1]} : vector<8x256xf32> to vector<8x16xf32>
    %234 = arith.addf %233, %15 : vector<8x16xf32>
    %235 = arith.mulf %227, %234 : vector<8x16xf32>
    %236 = arith.addf %225, %235 : vector<8x16xf32>
    %237 = arith.mulf %227, %234 : vector<8x16xf32>
    %cst_58 = arith.constant dense<0.000000e+00> : vector<8x128xf32>
    %238 = tpu.matmul %237, %5, %cst_58 {dimension_numbers = #tpu.dot_dimension_numbers<[1], [0], [0], [1], [0, 0, 1, 1], [], []>} : vector<8x16xf32>, vector<16x128xf32>, vector<8x128xf32> -> vector<8x128xf32>
    %239 = arith.addf %238, %230 : vector<8x128xf32>
    %240 = vector.extract_strided_slice %232 {offsets = [0, 128], sizes = [8, 128], strides = [1, 1]} : vector<8x256xf32> to vector<8x128xf32>
    %241 = arith.addf %239, %240 : vector<8x128xf32>
    %242 = arith.negf %241 : vector<8x128xf32>
    %243 = math.exp %242 : vector<8x128xf32>
    %cst_59 = arith.constant 1.000000e+00 : f32
    %244 = vector.broadcast %cst_59 : f32 to vector<8x128xf32>
    %245 = arith.addf %244, %243 : vector<8x128xf32>
    %246 = arith.divf %244, %245 : vector<8x128xf32>
    %247 = math.tanh %241 : vector<8x128xf32>
    %248 = vector.extract_strided_slice %246 {offsets = [0, 0], sizes = [8, 32], strides = [1, 1]} : vector<8x128xf32> to vector<8x32xf32>
    %249 = vector.extract_strided_slice %246 {offsets = [0, 32], sizes = [8, 32], strides = [1, 1]} : vector<8x128xf32> to vector<8x32xf32>
    %250 = vector.extract_strided_slice %247 {offsets = [0, 64], sizes = [8, 32], strides = [1, 1]} : vector<8x128xf32> to vector<8x32xf32>
    %251 = vector.extract_strided_slice %246 {offsets = [0, 96], sizes = [8, 32], strides = [1, 1]} : vector<8x128xf32> to vector<8x32xf32>
    %252 = arith.mulf %249, %205 : vector<8x32xf32>
    %253 = arith.mulf %248, %250 : vector<8x32xf32>
    %254 = arith.addf %252, %253 : vector<8x32xf32>
    %255 = math.tanh %254 : vector<8x32xf32>
    %256 = arith.mulf %251, %255 : vector<8x32xf32>
    %257 = arith.subf %215, %234 : vector<8x16xf32>
    %258 = math.absf %257 : vector<8x16xf32>
    %259 = arith.mulf %258, %216 : vector<8x16xf32>
    %c4 = arith.constant 4 : index
    %260 = memref.load %arg0[%c4] : memref<8xf32, #tpu.memory_space<smem>>
    %261 = vector.broadcast %260 : f32 to vector<8x16xf32>
    %262 = arith.mulf %259, %261 : vector<8x16xf32>
    %263 = arith.addf %214, %262 : vector<8x16xf32>
    %264 = vector.extract_strided_slice %0 {offsets = [0, 80], sizes = [8, 16], strides = [1, 1]} : vector<8x128xf32> to vector<8x16xf32>
    %265 = vector.extract_strided_slice %1 {offsets = [0, 80], sizes = [8, 16], strides = [1, 1]} : vector<8x128xf32> to vector<8x16xf32>
    %266 = vector.extract_strided_slice %2 {offsets = [0, 80], sizes = [8, 16], strides = [1, 1]} : vector<8x128xf32> to vector<8x16xf32>
    %cst_60 = arith.constant dense<0.000000e+00> : vector<8x32xf32>
    %267 = tpu.matmul %266, %3, %cst_60 {dimension_numbers = #tpu.dot_dimension_numbers<[1], [0], [0], [1], [0, 0, 1, 1], [], []>} : vector<8x16xf32>, vector<16x32xf32>, vector<8x32xf32> -> vector<8x32xf32>
    %268 = arith.addf %267, %9 : vector<8x32xf32>
    %cst_61 = arith.constant 0.000000e+00 : f32
    %269 = vector.broadcast %cst_61 : f32 to vector<8x32xf32>
    %270 = arith.maximumf %268, %269 : vector<8x32xf32>
    %cst_62 = arith.constant 0.000000e+00 : f32
    %271 = vector.broadcast %cst_62 : f32 to vector<8x32xf32>
    %272 = arith.subf %271, %270 : vector<8x32xf32>
    %273 = math.exp %272 : vector<8x32xf32>
    %274 = arith.mulf %265, %264 : vector<8x16xf32>
    %cst_63 = arith.constant 1.000000e+00 : f32
    %275 = vector.broadcast %cst_63 : f32 to vector<8x16xf32>
    %276 = arith.subf %275, %265 : vector<8x16xf32>
    %277 = tpu.concatenate %265, %274 in 1 : vector<8x16xf32>, vector<8x16xf32> -> vector<8x32xf32>
    %cst_64 = arith.constant dense<0.000000e+00> : vector<8x128xf32>
    %278 = tpu.matmul %277, %4, %cst_64 {dimension_numbers = #tpu.dot_dimension_numbers<[1], [0], [0], [1], [0, 0, 1, 1], [], []>} : vector<8x32xf32>, vector<32x128xf32>, vector<8x128xf32> -> vector<8x128xf32>
    %279 = arith.addf %278, %12 : vector<8x128xf32>
    %280 = arith.mulf %256, %273 : vector<8x32xf32>
    %cst_65 = arith.constant dense<0.000000e+00> : vector<8x256xf32>
    %281 = tpu.matmul %280, %6, %cst_65 {dimension_numbers = #tpu.dot_dimension_numbers<[1], [0], [0], [1], [0, 0, 1, 1], [], []>} : vector<8x32xf32>, vector<32x256xf32>, vector<8x256xf32> -> vector<8x256xf32>
    %282 = vector.extract_strided_slice %281 {offsets = [0, 0], sizes = [8, 16], strides = [1, 1]} : vector<8x256xf32> to vector<8x16xf32>
    %283 = arith.addf %282, %15 : vector<8x16xf32>
    %284 = arith.mulf %276, %283 : vector<8x16xf32>
    %285 = arith.addf %274, %284 : vector<8x16xf32>
    %286 = arith.mulf %276, %283 : vector<8x16xf32>
    %cst_66 = arith.constant dense<0.000000e+00> : vector<8x128xf32>
    %287 = tpu.matmul %286, %5, %cst_66 {dimension_numbers = #tpu.dot_dimension_numbers<[1], [0], [0], [1], [0, 0, 1, 1], [], []>} : vector<8x16xf32>, vector<16x128xf32>, vector<8x128xf32> -> vector<8x128xf32>
    %288 = arith.addf %287, %279 : vector<8x128xf32>
    %289 = vector.extract_strided_slice %281 {offsets = [0, 128], sizes = [8, 128], strides = [1, 1]} : vector<8x256xf32> to vector<8x128xf32>
    %290 = arith.addf %288, %289 : vector<8x128xf32>
    %291 = arith.negf %290 : vector<8x128xf32>
    %292 = math.exp %291 : vector<8x128xf32>
    %cst_67 = arith.constant 1.000000e+00 : f32
    %293 = vector.broadcast %cst_67 : f32 to vector<8x128xf32>
    %294 = arith.addf %293, %292 : vector<8x128xf32>
    %295 = arith.divf %293, %294 : vector<8x128xf32>
    %296 = math.tanh %290 : vector<8x128xf32>
    %297 = vector.extract_strided_slice %295 {offsets = [0, 0], sizes = [8, 32], strides = [1, 1]} : vector<8x128xf32> to vector<8x32xf32>
    %298 = vector.extract_strided_slice %295 {offsets = [0, 32], sizes = [8, 32], strides = [1, 1]} : vector<8x128xf32> to vector<8x32xf32>
    %299 = vector.extract_strided_slice %296 {offsets = [0, 64], sizes = [8, 32], strides = [1, 1]} : vector<8x128xf32> to vector<8x32xf32>
    %300 = vector.extract_strided_slice %295 {offsets = [0, 96], sizes = [8, 32], strides = [1, 1]} : vector<8x128xf32> to vector<8x32xf32>
    %301 = arith.mulf %298, %254 : vector<8x32xf32>
    %302 = arith.mulf %297, %299 : vector<8x32xf32>
    %303 = arith.addf %301, %302 : vector<8x32xf32>
    %304 = math.tanh %303 : vector<8x32xf32>
    %305 = arith.mulf %300, %304 : vector<8x32xf32>
    %306 = arith.subf %264, %283 : vector<8x16xf32>
    %307 = math.absf %306 : vector<8x16xf32>
    %308 = arith.mulf %307, %265 : vector<8x16xf32>
    %c5 = arith.constant 5 : index
    %309 = memref.load %arg0[%c5] : memref<8xf32, #tpu.memory_space<smem>>
    %310 = vector.broadcast %309 : f32 to vector<8x16xf32>
    %311 = arith.mulf %308, %310 : vector<8x16xf32>
    %312 = arith.addf %263, %311 : vector<8x16xf32>
    %313 = vector.extract_strided_slice %0 {offsets = [0, 96], sizes = [8, 16], strides = [1, 1]} : vector<8x128xf32> to vector<8x16xf32>
    %314 = vector.extract_strided_slice %1 {offsets = [0, 96], sizes = [8, 16], strides = [1, 1]} : vector<8x128xf32> to vector<8x16xf32>
    %315 = vector.extract_strided_slice %2 {offsets = [0, 96], sizes = [8, 16], strides = [1, 1]} : vector<8x128xf32> to vector<8x16xf32>
    %cst_68 = arith.constant dense<0.000000e+00> : vector<8x32xf32>
    %316 = tpu.matmul %315, %3, %cst_68 {dimension_numbers = #tpu.dot_dimension_numbers<[1], [0], [0], [1], [0, 0, 1, 1], [], []>} : vector<8x16xf32>, vector<16x32xf32>, vector<8x32xf32> -> vector<8x32xf32>
    %317 = arith.addf %316, %9 : vector<8x32xf32>
    %cst_69 = arith.constant 0.000000e+00 : f32
    %318 = vector.broadcast %cst_69 : f32 to vector<8x32xf32>
    %319 = arith.maximumf %317, %318 : vector<8x32xf32>
    %cst_70 = arith.constant 0.000000e+00 : f32
    %320 = vector.broadcast %cst_70 : f32 to vector<8x32xf32>
    %321 = arith.subf %320, %319 : vector<8x32xf32>
    %322 = math.exp %321 : vector<8x32xf32>
    %323 = arith.mulf %314, %313 : vector<8x16xf32>
    %cst_71 = arith.constant 1.000000e+00 : f32
    %324 = vector.broadcast %cst_71 : f32 to vector<8x16xf32>
    %325 = arith.subf %324, %314 : vector<8x16xf32>
    %326 = tpu.concatenate %314, %323 in 1 : vector<8x16xf32>, vector<8x16xf32> -> vector<8x32xf32>
    %cst_72 = arith.constant dense<0.000000e+00> : vector<8x128xf32>
    %327 = tpu.matmul %326, %4, %cst_72 {dimension_numbers = #tpu.dot_dimension_numbers<[1], [0], [0], [1], [0, 0, 1, 1], [], []>} : vector<8x32xf32>, vector<32x128xf32>, vector<8x128xf32> -> vector<8x128xf32>
    %328 = arith.addf %327, %12 : vector<8x128xf32>
    %329 = arith.mulf %305, %322 : vector<8x32xf32>
    %cst_73 = arith.constant dense<0.000000e+00> : vector<8x256xf32>
    %330 = tpu.matmul %329, %6, %cst_73 {dimension_numbers = #tpu.dot_dimension_numbers<[1], [0], [0], [1], [0, 0, 1, 1], [], []>} : vector<8x32xf32>, vector<32x256xf32>, vector<8x256xf32> -> vector<8x256xf32>
    %331 = vector.extract_strided_slice %330 {offsets = [0, 0], sizes = [8, 16], strides = [1, 1]} : vector<8x256xf32> to vector<8x16xf32>
    %332 = arith.addf %331, %15 : vector<8x16xf32>
    %333 = arith.mulf %325, %332 : vector<8x16xf32>
    %334 = arith.addf %323, %333 : vector<8x16xf32>
    %335 = arith.mulf %325, %332 : vector<8x16xf32>
    %cst_74 = arith.constant dense<0.000000e+00> : vector<8x128xf32>
    %336 = tpu.matmul %335, %5, %cst_74 {dimension_numbers = #tpu.dot_dimension_numbers<[1], [0], [0], [1], [0, 0, 1, 1], [], []>} : vector<8x16xf32>, vector<16x128xf32>, vector<8x128xf32> -> vector<8x128xf32>
    %337 = arith.addf %336, %328 : vector<8x128xf32>
    %338 = vector.extract_strided_slice %330 {offsets = [0, 128], sizes = [8, 128], strides = [1, 1]} : vector<8x256xf32> to vector<8x128xf32>
    %339 = arith.addf %337, %338 : vector<8x128xf32>
    %340 = arith.negf %339 : vector<8x128xf32>
    %341 = math.exp %340 : vector<8x128xf32>
    %cst_75 = arith.constant 1.000000e+00 : f32
    %342 = vector.broadcast %cst_75 : f32 to vector<8x128xf32>
    %343 = arith.addf %342, %341 : vector<8x128xf32>
    %344 = arith.divf %342, %343 : vector<8x128xf32>
    %345 = math.tanh %339 : vector<8x128xf32>
    %346 = vector.extract_strided_slice %344 {offsets = [0, 0], sizes = [8, 32], strides = [1, 1]} : vector<8x128xf32> to vector<8x32xf32>
    %347 = vector.extract_strided_slice %344 {offsets = [0, 32], sizes = [8, 32], strides = [1, 1]} : vector<8x128xf32> to vector<8x32xf32>
    %348 = vector.extract_strided_slice %345 {offsets = [0, 64], sizes = [8, 32], strides = [1, 1]} : vector<8x128xf32> to vector<8x32xf32>
    %349 = vector.extract_strided_slice %344 {offsets = [0, 96], sizes = [8, 32], strides = [1, 1]} : vector<8x128xf32> to vector<8x32xf32>
    %350 = arith.mulf %347, %303 : vector<8x32xf32>
    %351 = arith.mulf %346, %348 : vector<8x32xf32>
    %352 = arith.addf %350, %351 : vector<8x32xf32>
    %353 = math.tanh %352 : vector<8x32xf32>
    %354 = arith.mulf %349, %353 : vector<8x32xf32>
    %355 = arith.subf %313, %332 : vector<8x16xf32>
    %356 = math.absf %355 : vector<8x16xf32>
    %357 = arith.mulf %356, %314 : vector<8x16xf32>
    %c6 = arith.constant 6 : index
    %358 = memref.load %arg0[%c6] : memref<8xf32, #tpu.memory_space<smem>>
    %359 = vector.broadcast %358 : f32 to vector<8x16xf32>
    %360 = arith.mulf %357, %359 : vector<8x16xf32>
    %361 = arith.addf %312, %360 : vector<8x16xf32>
    %362 = vector.extract_strided_slice %0 {offsets = [0, 112], sizes = [8, 16], strides = [1, 1]} : vector<8x128xf32> to vector<8x16xf32>
    %363 = vector.extract_strided_slice %1 {offsets = [0, 112], sizes = [8, 16], strides = [1, 1]} : vector<8x128xf32> to vector<8x16xf32>
    %364 = vector.extract_strided_slice %2 {offsets = [0, 112], sizes = [8, 16], strides = [1, 1]} : vector<8x128xf32> to vector<8x16xf32>
    %cst_76 = arith.constant dense<0.000000e+00> : vector<8x32xf32>
    %365 = tpu.matmul %364, %3, %cst_76 {dimension_numbers = #tpu.dot_dimension_numbers<[1], [0], [0], [1], [0, 0, 1, 1], [], []>} : vector<8x16xf32>, vector<16x32xf32>, vector<8x32xf32> -> vector<8x32xf32>
    %366 = arith.addf %365, %9 : vector<8x32xf32>
    %cst_77 = arith.constant 0.000000e+00 : f32
    %367 = vector.broadcast %cst_77 : f32 to vector<8x32xf32>
    %368 = arith.maximumf %366, %367 : vector<8x32xf32>
    %cst_78 = arith.constant 0.000000e+00 : f32
    %369 = vector.broadcast %cst_78 : f32 to vector<8x32xf32>
    %370 = arith.subf %369, %368 : vector<8x32xf32>
    %371 = math.exp %370 : vector<8x32xf32>
    %372 = arith.mulf %363, %362 : vector<8x16xf32>
    %cst_79 = arith.constant 1.000000e+00 : f32
    %373 = vector.broadcast %cst_79 : f32 to vector<8x16xf32>
    %374 = arith.subf %373, %363 : vector<8x16xf32>
    %375 = arith.mulf %354, %371 : vector<8x32xf32>
    %cst_80 = arith.constant dense<0.000000e+00> : vector<8x256xf32>
    %376 = tpu.matmul %375, %6, %cst_80 {dimension_numbers = #tpu.dot_dimension_numbers<[1], [0], [0], [1], [0, 0, 1, 1], [], []>} : vector<8x32xf32>, vector<32x256xf32>, vector<8x256xf32> -> vector<8x256xf32>
    %377 = vector.extract_strided_slice %376 {offsets = [0, 0], sizes = [8, 16], strides = [1, 1]} : vector<8x256xf32> to vector<8x16xf32>
    %378 = arith.addf %377, %15 : vector<8x16xf32>
    %379 = arith.mulf %374, %378 : vector<8x16xf32>
    %380 = arith.addf %372, %379 : vector<8x16xf32>
    %381 = arith.subf %362, %378 : vector<8x16xf32>
    %382 = math.absf %381 : vector<8x16xf32>
    %383 = arith.mulf %382, %363 : vector<8x16xf32>
    %c7 = arith.constant 7 : index
    %384 = memref.load %arg0[%c7] : memref<8xf32, #tpu.memory_space<smem>>
    %385 = vector.broadcast %384 : f32 to vector<8x16xf32>
    %386 = arith.mulf %383, %385 : vector<8x16xf32>
    %387 = arith.addf %361, %386 : vector<8x16xf32>
    %388 = tpu.concatenate %40, %89, %138, %187, %236, %285, %334, %380 in 1 : vector<8x16xf32>, vector<8x16xf32>, vector<8x16xf32>, vector<8x16xf32>, vector<8x16xf32>, vector<8x16xf32>, vector<8x16xf32>, vector<8x16xf32> -> vector<8x128xf32>
    %c0_81 = arith.constant 0 : index
    %c0_82 = arith.constant 0 : index
    %389 = vector.load %arg10[%c0_81, %c0_82] : memref<8x128xf32, #tpu.memory_space<vmem>>, vector<8x128xf32>
    tpu.vector_store %arg10[%c0_81, %c0_82], %388 {strides = array<i32>} : memref<8x128xf32, #tpu.memory_space<vmem>>, vector<8x128xf32>,
    %390 = vector.shape_cast %387 : vector<8x16xf32> to vector<1x8x16xf32>
    %cst_83 = arith.constant dense<0.000000e+00> : vector<1xf32>
    %391 = vector.multi_reduction <add>, %390, %cst_83 [1, 2] : vector<1x8x16xf32> to vector<1xf32>
    %392 = vector.shape_cast %391 : vector<1xf32> to vector<1x1x1xf32>
    %393 = vector.extract %392[0, 0, 0] : f32 from vector<1x1x1xf32>
    %394 = vector.broadcast %393 : f32 to vector<1x1xf32>
    %c0_84 = arith.constant 0 : index
    %c0_85 = arith.constant 0 : index
    %395 = vector.load %arg11[%c0_84, %c0_85] : memref<1x1xf32, #tpu.memory_space<vmem>>, vector<1x1xf32>
    tpu.vector_store %arg11[%c0_84, %c0_85], %394 {strides = array<i32>} : memref<1x1xf32, #tpu.memory_space<vmem>>, vector<1x1xf32>,
    return
  }
}

</mosaic_0001>

<bundles_post_ra>
// kernel: rits_i_forward.1
= control target key start
LH: loop header
LB: loop body
LE: loop exit
PB: predicated region body
PF: predicated region fallthrough
CT: control target
= control target key end

     0   :  { %17 = vsyncpa [#allocation4], 0  ;;  %s3990_s0 = inlined_call_operand.vmem [shape: f32[8], index: 0, kind: input, shape index: {}]   ;;  %s3991_s1 = inlined_call_operand.vmem [shape: f32[8,128], index: 1, kind: input, shape index: {}]   ;;  %s3992_s2 = inlined_call_operand.vmem [shape: f32[8,128], index: 2, kind: input, shape index: {}]   ;;  %s3993_s3 = inlined_call_operand.vmem [shape: f32[8,128], index: 3, kind: input, shape index: {}]   ;;  %s3994_s4 = inlined_call_operand.vmem [shape: f32[16,32], index: 4, kind: input, shape index: {}]   ;;  %s3995_s5 = inlined_call_operand.vmem [shape: f32[1,32], index: 5, kind: input, shape index: {}]   ;;  %s3996_s6 = inlined_call_operand.vmem [shape: f32[32,128], index: 6, kind: input, shape index: {}]   ;;  %s3997_s7 = inlined_call_operand.vmem [shape: f32[1,128], index: 7, kind: input, shape index: {}]   ;;  %s3998_s8 = inlined_call_operand.vmem [shape: f32[32,256], index: 8, kind: input, shape index: {}]   ;;  %s3999_s9 = inlined_call_operand.vmem [shape: f32[1,16], index: 9, kind: input, shape index: {}]   ;;  %s4000_s10 = inlined_call_operand.vmem [shape: f32[8,128], index: 10, kind: output, shape index: {0}]   ;;  %s4001_s11 = inlined_call_operand.hbm [shape: f32[1,1], index: 11, kind: output, shape index: {1}]  }
   0x1   :  { %18 = vsyncpa [#allocation3], 0  ;;  %s25_s19 = sshll.u32 %s3990_s0, 4  ;;  %s26_s19 = int_to_ptr.vmem [resolvable:$true] %s25_s19 }
   0x2   :  { %s3204_s20 = scalar_lea.vmem %s26_s19, 16  ;;  %p3209_p1 = scmp.lt.s32.totalorder %s26_s19, %s26_s19 }
   0x3   :  { %p3205_p0 = scmp.ne.s32.totalorder %s26_s19, %s3204_s20  ;;  %p3210_p2 = scmp.lt.s32.totalorder %s3204_s20, %s3204_s20 }
   0x5   :  { %p3211_p3 = por %p3210_p2, %p3209_p1 }
   0x7   :  { %p3212_p4 = pnand %p3211_p3, %p3205_p0 }
   0x9   :  { %3215 = shalt.err (!%p3212_p4)
}
   0xa   :  { %s3240_s21 = smov [#allocation2]  }
   0xb   :  { %28 = dma.vmem_to_smem %s26_s19, 16, %s3240_s21, [#allocation4]  }
   0xc   :  { %3236 = dma.done.wait [#allocation4], 16  }
   0xd   :  { %3237 = vsyncadd [#allocation4], 4294967280 }
   0xe   :  { %50 = sfence }
   0xf   :  { %v3317_v0 = vld [vmem:[%s3994_s4 + $0x8] sm:$0xff]  ;;  %v3241_v1 = vmov 0.0   ;;  %v3323_v2 = vld [vmem:[%s3994_s4] sm:$0xff]  ;;  %vm3242_vm0 = vmmov 0   ;;  %vm89_vm1 = vcmask 130048   ;;  %v3344_v4 = vld [vmem:[%s3998_s8 + $0x38] sm:$0xff] }
  0x10   :  { %2919 = vmatprep.subr.mxu0 %v3241_v1  ;;  %2923 = vmatprep.mubr.msk.f32.mxu0 %vm3242_vm0, %v3241_v1  ;;  %v3331_v3 = vld [vmem:[%s3993_s3] sm:$0xff]  ;;  %v3350_v5 = vld [vmem:[%s3998_s8 + $0x30] sm:$0xff]  ;;  %v3356_v6 = vld [vmem:[%s3998_s8 + $0x28] sm:$0xff]  ;;  %s3243_s14 = smov 16   ;;  %vm174_vm2 = vcmask 261120   ;;  %s3244_s19 = smov 112  }
  0x11   :  { %2920 = vmatpush3.msra.mxu0 %v3317_v0  ;;  %2926 = vmatprep.subr.mxu1 %v3241_v1  ;;  %v3362_v7 = vld [vmem:[%s3998_s8 + $0x20] sm:$0xff]  ;;  %v3368_v8 = vld [vmem:[%s3998_s8 + $0x18] sm:$0xff]  ;;  %v3374_v9 = vld [vmem:[%s3998_s8 + $0x10] sm:$0xff]  ;;  %s3245_s0 = smov 64   ;;  %s3246_s24 = smov 32   ;;  %vm2749_vm3 = vcmask 392192  }
  0x12   :  { %2921 = vmatprep.subr.mxu0 %v3241_v1  ;;  %2934 = vmatprep.mubr.msk.f32.mxu1 %vm3242_vm0, %v3241_v1  ;;  %v3380_v10 = vld [vmem:[%s3998_s8 + $0x8] sm:$0xff]  ;;  %v3386_v11 = vld [vmem:[%s3998_s8] sm:$0xff]  ;;  %v3400_v14 = vld [vmem:[%s3996_s6 + $0x18] sm:$0xff]  ;;  %s3247_s25 = smov 96   ;;  %s3248_s26 = smov 80   ;;  %vm2751_vm4 = vcmask 523264  }
  0x13   :  { %2922 = vmatpush3.msra.mxu0 %v3323_v2  ;;  %v51_v12 = vld [vmem:[%s3991_s1] sm:$0xff]  ;;  %2927 = vmatpush3.msra.mxu1 %v3400_v14  ;;  %v3410_v16 = vld [vmem:[%s3996_s6 + $0x10] sm:$0xff]  ;;  %v3416_v17 = vld [vmem:[%s3996_s6 + $0x8] sm:$0xff]  ;;  %s3249_s27 = smov 48   ;;  %vm2753_vm5 = vcmask 654336   ;;  %vm2755_vm6 = vcmask 785408  }
  0x14   :  { %2924 = vmatmul.mubr.msk.f32.vlgmr.msra.gmra.mxu0 %vm89_vm1, %v3331_v3  ;;  %276 = vmatprep.subr.mxu0 %v3344_v4  ;;  %v3395_v13 = vld [vmem:[%s3992_s2] sm:$0xff]  ;;  %s2805_s30 = sld [smem:[#allocation2 + $0x1]]  ;;  %vm2757_vm7 = vcmask 916480   ;;  %vm2771_vm8 = vcmask 0  }
  0x15   :  { %316 = vmatprep.mubr.f32.mxu0 %v3241_v1  ;;  %277 = vmatpush1.msra.mxu0 %v3350_v5  ;;  %v3404_v15 = vmul.f32 %v3395_v13, %v51_v12  ;;  %v3425_v18 = vld [vmem:[%s3996_s6] sm:$0xff]  ;;  %v3461_v33 = vsub.f32 1.0, %v3395_v13  ;;  %s2811_s12 = sld [smem:[#allocation2 + $0x2]] }
  0x16   :  { %278 = vmatprep.subr.mxu0 %v3356_v6  ;;  %2928 = vmatprep.subr.mxu1 %v3241_v1  ;;  %v3434_v19 = vld [vmem:[%s3995_s5] ss:$0 sm:$0xff]  ;;  %s2823_s13 = sld [smem:[#allocation2 + $0x4]] }
  0x17   :  { %279 = vmatpush1.msra.mxu0 %v3362_v7  ;;  %170 = vrot.lane.b32.xlu0 %v3404_v15, %s3243_s14  ;;  %v3458_v32 = vld [vmem:[%s3999_s9] ss:$0 sm:$0xff] }
  0x18   :  { %280 = vmatprep.subr.mxu0 %v3368_v8  ;;  %2929 = vmatpush3.msra.mxu1 %v3410_v16  ;;  %v3495_v38 = vld [vmem:[%s3997_s7] ss:$0 sm:$0xff] }
  0x19   :  { %281 = vmatpush1.msra.mxu0 %v3374_v9  ;;  %2930 = vmatprep.subr.mxu1 %v3241_v1 }
  0x1a   :  { %282 = vmatprep.subr.mxu0 %v3380_v10  ;;  %2931 = vmatpush3.msra.mxu1 %v3416_v17 }
  0x1b   :  { %283 = vmatpush1.msra.mxu0 %v3386_v11  ;;  %2932 = vmatprep.subr.mxu1 %v3241_v1 }
  0x1c   :  { %2944 = vmatprep.subr.mxu0 %v3241_v1  ;;  %2933 = vmatpush3.msra.mxu1 %v3425_v18 }
  0x1d   :  { %2937 = vmatprep.subr.mxu1 %v3241_v1  ;;  %431 = vrot.lane.b32.xlu0 %v3331_v3, %s3244_s19 }
  0x89   :  { %v171_v26 = vpop.permute.xlu0 %170 }
  0x8a   :  { %v173_v27 = vsel %vm89_vm1, %v3395_v13, %v171_v26 }
  0x8b   :  { %2935 = vmatmul.mubr.msk.f32.vlgmr.msra.gmra.mxu1 %vm174_vm2, %v173_v27 }
  0x8c   :  { %2938 = vmatpush3.msra.mxu1 %v3400_v14  ;;  %2941 = vmatprep.mubr.msk.f32.mxu1 %vm3242_vm0, %v3241_v1 }
  0x8d   :  { %2939 = vmatprep.subr.mxu1 %v3241_v1 }
  0x8e   :  { %2940 = vmatpush3.msra.mxu1 %v3410_v16 }
  0x8f   :  { %2951 = vmatprep.subr.mxu1 %v3241_v1  ;;  %v432_v37 = vpop.permute.xlu0 %431 }
  0xd4   :  { %v159_v20 = vpop.f32.mrf.mxu0 }
  0xd5   :  { %v160_v21 = vadd.f32 %v3434_v19, %v159_v20 }
  0xd6   :  { %v2925_v22 = vpop.f32.mrf.mxu0 }
  0xd7   :  { %v163_v23 = vmax.f32 %v160_v21, 0.0 }
  0xd9   :  { %v164_v24 = vsub.f32 0.0, %v163_v23 }
  0xdb   :  { %v165_v25 = vmul.f32 1.442695, %v164_v24 }
  0xdd   :  { %3114 = vpow2.f32 %v165_v25 }
  0xea   :  { %v3115_v28 = vpop.eup %3114 }
  0xeb   :  { %v248_v29 = vmul.f32 0.0, %v3115_v28 }
  0xed   :  { %2797 = vmatmul.mubr.msk.f32.vlgmr.msra.gmra.mxu0 %vm174_vm2, %v248_v29 }
  0xee   :  { %2945 = vmatpush3.msra.mxu0 %v3317_v0  ;;  %2948 = vmatprep.mubr.msk.f32.mxu0 %vm3242_vm0, %v3241_v1 }
  0xef   :  { %2946 = vmatprep.subr.mxu0 %v3241_v1 }
  0xf0   :  { %2947 = vmatpush3.msra.mxu0 %v3323_v2 }
  0xf1   :  { %621 = vmatprep.subr.mxu0 %v3344_v4  ;;  %2949 = vmatmul.mubr.msk.f32.vlgmr.msra.gmra.mxu0 %vm89_vm1, %v432_v37 }
  0xf2   :  { %622 = vmatpush1.msra.mxu0 %v3350_v5  ;;  %661 = vmatprep.mubr.f32.mxu0 %v3241_v1 }
  0xf3   :  { %623 = vmatprep.subr.mxu0 %v3356_v6 }
  0xf4   :  { %624 = vmatpush1.msra.mxu0 %v3362_v7 }
  0xf5   :  { %625 = vmatprep.subr.mxu0 %v3368_v8 }
  0xf6   :  { %626 = vmatpush1.msra.mxu0 %v3374_v9 }
  0xf7   :  { %627 = vmatprep.subr.mxu0 %v3380_v10 }
  0xf8   :  { %628 = vmatpush1.msra.mxu0 %v3386_v11 }
  0xf9   :  { %2969 = vmatprep.subr.mxu0 %v3241_v1 }
 0x14b   :  { %v244_v30 = vpop.f32.mrf.mxu1 }
 0x14c   :  { %v245_v39 = vadd.f32 %v3495_v38, %v244_v30 }
 0x14d   :  { %v2936_v31 = vpop.f32.mrf.mxu1 }
 0x1ad   :  { %v318_v34 = vpop.f32.mrf.mxu0 }
 0x1ae   :  { %v3464_v35 = vadd.f32 %v3458_v32, %v318_v34 }
 0x1af   :  { %v320_v42 = vpop.f32.mrf.mxu0 }
 0x1b0   :  { %v3468_v36 = vmul.f32 %v3464_v35, %v3461_v33 }
 0x1b1   :  { %v501_v46 = vpop.f32.mrf.mxu0 }
 0x1b2   :  { %2942 = vmatmul.mubr.msk.f32.vlgmr.msra.gmra.mxu1 %vm89_vm1, %v3468_v36  ;;  %v502_v49 = vadd.f32 %v3434_v19, %v501_v46  ;;  %v325_v29 = vadd.f32 %v3468_v36, %v3404_v15 }
 0x1b3   :  { %2952 = vmatpush3.msra.mxu1 %v3400_v14  ;;  %2959 = vmatprep.mubr.msk.f32.mxu1 %vm3242_vm0, %v3241_v1  ;;  %v2950_v47 = vpop.f32.mrf.mxu0 }
 0x1b4   :  { %2953 = vmatprep.subr.mxu1 %v3241_v1  ;;  %v505_v50 = vmax.f32 %v502_v49, 0.0 }
 0x1b5   :  { %2954 = vmatpush3.msra.mxu1 %v3410_v16 }
 0x1b6   :  { %2955 = vmatprep.subr.mxu1 %v3241_v1  ;;  %v506_v53 = vsub.f32 0.0, %v505_v50 }
 0x1b7   :  { %2956 = vmatpush3.msra.mxu1 %v3416_v17 }
 0x1b8   :  { %2957 = vmatprep.subr.mxu1 %v3241_v1  ;;  %v507_v54 = vmul.f32 1.442695, %v506_v53 }
 0x1b9   :  { %2958 = vmatpush3.msra.mxu1 %v3425_v18 }
 0x1ba   :  { %2962 = vmatprep.subr.mxu1 %v3241_v1 }
 0x272   :  { %v395_v40 = vpop.f32.mrf.mxu1 }
 0x273   :  { %v396_v41 = vadd.f32 %v395_v40, %v245_v39 }
 0x274   :  { %v2943_v43 = vpop.f32.mrf.mxu1 }
 0x275   :  { %v399_v44 = vadd.f32 %v396_v41, %v320_v42 }
 0x277   :  { %3116 = vtanh.f32 %v399_v44  ;;  %v2799_v48 = vmul.f32 -1.442695, %v399_v44 }
 0x279   :  { %3118 = vpow2.f32 %v2799_v48 }
 0x284   :  { %v3117_v45 = vpop.eup %3116 }
 0x285   :  { %409 = vrot.lane.b32.xlu1 %v3117_v45, %s3245_s0 }
 0x286   :  { %v3119_v51 = vpop.eup %3118 }
 0x287   :  { %v403_v52 = vadd.f32 1.0, %v3119_v51 }
 0x289   :  { %3120 = vrcp.f32 %v403_v52 }
 0x28a   :  { %3122 = vpow2.f32 %v507_v54 }
 0x296   :  { %v3121_v55 = vpop.eup %3120 }
 0x297   :  { %v3123_v58 = vpop.eup %3122  ;;  %v407_v59 = vmul.f32 0.0, %v3121_v55 }
 0x2f7   :  { %v410_v56 = vpop.permute.xlu1 %409 }
 0x2f8   :  { %v412_v57 = vmul.f32 %v3121_v55, %v410_v56 }
 0x2fa   :  { %414 = vrot.lane.b32.xlu1 %v412_v57, %s3246_s24 }
 0x2fe   :  { %588 = vrot.lane.b32.xlu1 %v3123_v58, %s3247_s25 }
 0x36c   :  { %v415_v60 = vpop.permute.xlu1 %414 }
 0x36d   :  { %v3502_v61 = vadd.f32 %v415_v60, %v407_v59 }
 0x36f   :  { %3124 = vtanh.f32 %v3502_v61 }
 0x370   :  { %v589_v12 = vpop.permute.xlu1 %588 }
 0x37c   :  { %v3125_v62 = vpop.eup %3124 }
 0x37d   :  { %420 = vrot.lane.b32.xlu0 %v3125_v62, %s3245_s0 }
 0x3ef   :  { %v421_v63 = vpop.permute.xlu0 %420 }
 0x3f0   :  { %v423_v20 = vmul.f32 %v3121_v55, %v421_v63 }
 0x3f2   :  { %v591_v21 = vmul.f32 %v589_v12, %v423_v20 }
 0x3f4   :  { %593 = vrot.lane.b32.xlu0 %v591_v21, %s3246_s24 }
 0x3f8   :  { %510 = vrot.lane.b32.xlu0 %v3395_v13, %s3244_s19 }
 0x3fc   :  { %786 = vrot.lane.b32.xlu0 %v3331_v3, %s3247_s25 }
 0x466   :  { %v594_v22 = vpop.permute.xlu0 %593 }
 0x467   :  { %2802 = vmatmul.mubr.msk.f32.vlgmr.msra.gmra.mxu0 %vm174_vm2, %v594_v22 }
 0x468   :  { %2970 = vmatpush3.msra.mxu0 %v3317_v0  ;;  %2973 = vmatprep.mubr.msk.f32.mxu0 %vm3242_vm0, %v3241_v1 }
 0x469   :  { %2971 = vmatprep.subr.mxu0 %v3241_v1 }
 0x46a   :  { %2972 = vmatpush3.msra.mxu0 %v3323_v2  ;;  %v511_v23 = vpop.permute.xlu0 %510 }
 0x46b   :  { %978 = vmatprep.subr.mxu0 %v3344_v4  ;;  %v513_v24 = vsel %vm89_vm1, %v511_v23, %v3404_v15 }
 0x46c   :  { %2960 = vmatmul.mubr.msk.f32.vlgmr.msra.gmra.mxu1 %vm174_vm2, %v513_v24 }
 0x46d   :  { %2963 = vmatpush3.msra.mxu1 %v3400_v14  ;;  %2966 = vmatprep.mubr.msk.f32.mxu1 %vm3242_vm0, %v3241_v1 }
 0x46e   :  { %2964 = vmatprep.subr.mxu1 %v3241_v1  ;;  %v787_v36 = vpop.permute.xlu0 %786 }
 0x46f   :  { %2965 = vmatpush3.msra.mxu1 %v3410_v16  ;;  %2974 = vmatmul.mubr.msk.f32.vlgmr.msra.gmra.mxu0 %vm89_vm1, %v787_v36 }
 0x470   :  { %2976 = vmatprep.subr.mxu1 %v3241_v1  ;;  %979 = vmatpush1.msra.mxu0 %v3350_v5 }
 0x471   :  { %1018 = vmatprep.mubr.f32.mxu0 %v3241_v1  ;;  %980 = vmatprep.subr.mxu0 %v3356_v6 }
 0x472   :  { %981 = vmatpush1.msra.mxu0 %v3362_v7 }
 0x473   :  { %982 = vmatprep.subr.mxu0 %v3368_v8 }
 0x474   :  { %983 = vmatpush1.msra.mxu0 %v3374_v9 }
 0x475   :  { %984 = vmatprep.subr.mxu0 %v3380_v10 }
 0x476   :  { %985 = vmatpush1.msra.mxu0 %v3386_v11 }
 0x477   :  { %2994 = vmatprep.subr.mxu0 %v3241_v1 }
 0x527   :  { %v663_v25 = vpop.f32.mrf.mxu0 }
 0x528   :  { %v668_v26 = vadd.f32 %v3458_v32, %v663_v25 }
 0x529   :  { %v665_v43 = vpop.f32.mrf.mxu0 }
 0x52a   :  { %670 = vrot.lane.b32.xlu1 %v668_v26, %s3243_s14 }
 0x52c   :  { %v583_v34 = vpop.f32.mrf.mxu1 }
 0x52d   :  { %v584_v40 = vadd.f32 %v3495_v38, %v583_v34 }
 0x52e   :  { %v2961_v37 = vpop.f32.mrf.mxu1 }
 0x52f   :  { %v856_v47 = vpop.f32.mrf.mxu0 }
 0x530   :  { %v857_v50 = vadd.f32 %v3434_v19, %v856_v47 }
 0x531   :  { %v2975_v48 = vpop.f32.mrf.mxu0 }
 0x532   :  { %v860_v51 = vmax.f32 %v857_v50, 0.0 }
 0x534   :  { %v861_v54 = vsub.f32 0.0, %v860_v51 }
 0x536   :  { %v862_v55 = vmul.f32 1.442695, %v861_v54 }
 0x59c   :  { %v3529_v27 = vpop.permute.xlu1 %670 }
 0x59d   :  { %v673_v28 = vmul.f32 %v3529_v27, %v3461_v33 }
 0x59f   :  { %v674_v30 = vadd.f32 %v673_v28, %v3404_v15  ;;  %676 = vrot.lane.b32.xlu1 %v673_v28, %s3244_s19 }
 0x5a1   :  { %v3538_v31 = vsel %vm89_vm1, %v325_v29, %v674_v30 }
 0x611   :  { %v677_v39 = vpop.permute.xlu1 %676 }
 0x612   :  { %2967 = vmatmul.mubr.msk.f32.vlgmr.msra.gmra.mxu1 %vm89_vm1, %v677_v39 }
 0x613   :  { %2977 = vmatpush3.msra.mxu1 %v3400_v14  ;;  %2984 = vmatprep.mubr.msk.f32.mxu1 %vm3242_vm0, %v3241_v1 }
 0x614   :  { %2978 = vmatprep.subr.mxu1 %v3241_v1 }
 0x615   :  { %2979 = vmatpush3.msra.mxu1 %v3410_v16 }
 0x616   :  { %2980 = vmatprep.subr.mxu1 %v3241_v1 }
 0x617   :  { %2981 = vmatpush3.msra.mxu1 %v3416_v17 }
 0x618   :  { %2982 = vmatprep.subr.mxu1 %v3241_v1 }
 0x619   :  { %2983 = vmatpush3.msra.mxu1 %v3425_v18 }
 0x61a   :  { %2987 = vmatprep.subr.mxu1 %v3241_v1 }
 0x6d2   :  { %v746_v41 = vpop.f32.mrf.mxu1 }
 0x6d3   :  { %v747_v42 = vadd.f32 %v746_v41, %v584_v40 }
 0x6d4   :  { %v2968_v44 = vpop.f32.mrf.mxu1 }
 0x6d5   :  { %v750_v45 = vadd.f32 %v747_v42, %v665_v43 }
 0x6d7   :  { %3126 = vtanh.f32 %v750_v45  ;;  %v2804_v49 = vmul.f32 -1.442695, %v750_v45 }
 0x6d9   :  { %3128 = vpow2.f32 %v2804_v49 }
 0x6e4   :  { %v3127_v46 = vpop.eup %3126 }
 0x6e5   :  { %760 = vrot.lane.b32.xlu1 %v3127_v46, %s3245_s0 }
 0x6e6   :  { %v3129_v52 = vpop.eup %3128 }
 0x6e7   :  { %v754_v53 = vadd.f32 1.0, %v3129_v52 }
 0x6e9   :  { %3130 = vrcp.f32 %v754_v53 }
 0x6ea   :  { %3132 = vpow2.f32 %v862_v55 }
 0x6f6   :  { %v3131_v56 = vpop.eup %3130 }
 0x6f7   :  { %v3133_v59 = vpop.eup %3132  ;;  %v758_v60 = vmul.f32 %v3131_v56, %v3502_v61 }
 0x757   :  { %v761_v57 = vpop.permute.xlu1 %760 }
 0x758   :  { %v763_v58 = vmul.f32 %v3131_v56, %v761_v57 }
 0x75a   :  { %765 = vrot.lane.b32.xlu0 %v763_v58, %s3246_s24 }
 0x75e   :  { %945 = vrot.lane.b32.xlu0 %v3133_v59, %s3247_s25 }
 0x7cc   :  { %v766_v62 = vpop.permute.xlu0 %765 }
 0x7cd   :  { %v3567_v63 = vadd.f32 %v766_v62, %v758_v60 }
 0x7cf   :  { %3134 = vtanh.f32 %v3567_v63 }
 0x7d0   :  { %v946_v21 = vpop.permute.xlu0 %945 }
 0x7dc   :  { %v3135_v12 = vpop.eup %3134 }
 0x7dd   :  { %771 = vrot.lane.b32.xlu1 %v3135_v12, %s3245_s0 }
 0x84f   :  { %v772_v20 = vpop.permute.xlu1 %771 }
 0x850   :  { %v774_v22 = vmul.f32 %v3131_v56, %v772_v20 }
 0x852   :  { %v948_v23 = vmul.f32 %v946_v21, %v774_v22 }
 0x854   :  { %950 = vrot.lane.b32.xlu1 %v948_v23, %s3246_s24 }
 0x858   :  { %864 = vrot.lane.b32.xlu1 %v3395_v13, %s3247_s25 }
 0x8c6   :  { %v951_v24 = vpop.permute.xlu1 %950 }
 0x8c7   :  { %2808 = vmatmul.mubr.msk.f32.vlgmr.msra.gmra.mxu0 %vm174_vm2, %v951_v24 }
 0x8c8   :  { %2995 = vmatpush3.msra.mxu0 %v3317_v0  ;;  %2998 = vmatprep.mubr.msk.f32.mxu0 %vm3242_vm0, %v3241_v1 }
 0x8c9   :  { %2996 = vmatprep.subr.mxu0 %v3241_v1 }
 0x8ca   :  { %2997 = vmatpush3.msra.mxu0 %v3323_v2  ;;  %v865_v29 = vpop.permute.xlu1 %864 }
 0x8cb   :  { %1335 = vmatprep.subr.mxu0 %v3344_v4 }
 0x987   :  { %v1020_v61 = vpop.f32.mrf.mxu0 }
 0x988   :  { %v1025_v25 = vadd.f32 %v3458_v32, %v1020_v61 }
 0x989   :  { %v1022_v45 = vpop.f32.mrf.mxu0 }
 0x98a   :  { %1027 = vrot.lane.b32.xlu0 %v1025_v25, %s3246_s24 }
 0x98e   :  { %867 = vrot.lane.b32.xlu0 %v3404_v15, %s3244_s19 }
 0x992   :  { %1143 = vrot.lane.b32.xlu0 %v3331_v3, %s3248_s26 }
 0x9fc   :  { %v3587_v26 = vpop.permute.xlu0 %1027 }
 0x9fd   :  { %v1030_v28 = vmul.f32 %v3587_v26, %v3461_v33 }
 0x9ff   :  { %v1031_v30 = vadd.f32 %v1030_v28, %v3404_v15  ;;  %1033 = vrot.lane.b32.xlu1 %v1030_v28, %s3247_s25 }
 0xa00   :  { %v868_v34 = vpop.permute.xlu0 %867 }
 0xa01   :  { %v3595_v37 = vsel %vm174_vm2, %v3538_v31, %v1031_v30  ;;  %v870_v39 = vsel %vm89_vm1, %v865_v29, %v868_v34 }
 0xa02   :  { %2985 = vmatmul.mubr.msk.f32.vlgmr.msra.gmra.mxu1 %vm174_vm2, %v870_v39 }
 0xa03   :  { %2988 = vmatpush3.msra.mxu1 %v3400_v14  ;;  %2991 = vmatprep.mubr.msk.f32.mxu1 %vm3242_vm0, %v3241_v1 }
 0xa04   :  { %2989 = vmatprep.subr.mxu1 %v3241_v1  ;;  %v1144_v41 = vpop.permute.xlu0 %1143 }
 0xa05   :  { %2990 = vmatpush3.msra.mxu1 %v3410_v16  ;;  %2999 = vmatmul.mubr.msk.f32.vlgmr.msra.gmra.mxu0 %vm89_vm1, %v1144_v41 }
 0xa06   :  { %3001 = vmatprep.subr.mxu1 %v3241_v1  ;;  %1336 = vmatpush1.msra.mxu0 %v3350_v5 }
 0xa07   :  { %1375 = vmatprep.mubr.f32.mxu0 %v3241_v1  ;;  %1337 = vmatprep.subr.mxu0 %v3356_v6 }
 0xa08   :  { %1338 = vmatpush1.msra.mxu0 %v3362_v7 }
 0xa09   :  { %1339 = vmatprep.subr.mxu0 %v3368_v8 }
 0xa0a   :  { %1340 = vmatpush1.msra.mxu0 %v3374_v9 }
 0xa0b   :  { %1341 = vmatprep.subr.mxu0 %v3380_v10 }
 0xa0c   :  { %1342 = vmatpush1.msra.mxu0 %v3386_v11 }
 0xa0d   :  { %3019 = vmatprep.subr.mxu0 %v3241_v1 }
 0xa71   :  { %v1034_v36 = vpop.permute.xlu1 %1033 }
 0xa72   :  { %2992 = vmatmul.mubr.msk.f32.vlgmr.msra.gmra.mxu1 %vm89_vm1, %v1034_v36 }
 0xa73   :  { %3002 = vmatpush3.msra.mxu1 %v3400_v14  ;;  %3009 = vmatprep.mubr.msk.f32.mxu1 %vm3242_vm0, %v3241_v1 }
 0xa74   :  { %3003 = vmatprep.subr.mxu1 %v3241_v1 }
 0xa75   :  { %3004 = vmatpush3.msra.mxu1 %v3410_v16 }
 0xa76   :  { %3005 = vmatprep.subr.mxu1 %v3241_v1 }
 0xa77   :  { %3006 = vmatpush3.msra.mxu1 %v3416_v17 }
 0xa78   :  { %3007 = vmatprep.subr.mxu1 %v3241_v1 }
 0xa79   :  { %3008 = vmatpush3.msra.mxu1 %v3425_v18 }
 0xa7a   :  { %3012 = vmatprep.subr.mxu1 %v3241_v1 }
 0xac2   :  { %v940_v31 = vpop.f32.mrf.mxu1 }
 0xac3   :  { %v941_v42 = vadd.f32 %v3495_v38, %v940_v31 }
 0xac4   :  { %v2986_v40 = vpop.f32.mrf.mxu1 }
 0xac5   :  { %v1213_v49 = vpop.f32.mrf.mxu0 }
 0xac6   :  { %v1214_v52 = vadd.f32 %v3434_v19, %v1213_v49 }
 0xac7   :  { %v3000_v50 = vpop.f32.mrf.mxu0 }
 0xac8   :  { %v1217_v53 = vmax.f32 %v1214_v52, 0.0 }
 0xaca   :  { %v1218_v56 = vsub.f32 0.0, %v1217_v53 }
 0xacc   :  { %v1219_v57 = vmul.f32 1.442695, %v1218_v56 }
 0xb32   :  { %v1103_v43 = vpop.f32.mrf.mxu1 }
 0xb33   :  { %v1104_v44 = vadd.f32 %v1103_v43, %v941_v42 }
 0xb34   :  { %v2993_v46 = vpop.f32.mrf.mxu1 }
 0xb35   :  { %v1107_v47 = vadd.f32 %v1104_v44, %v1022_v45 }
 0xb37   :  { %3136 = vtanh.f32 %v1107_v47  ;;  %v2810_v51 = vmul.f32 -1.442695, %v1107_v47 }
 0xb39   :  { %3138 = vpow2.f32 %v2810_v51 }
 0xb44   :  { %v3137_v48 = vpop.eup %3136 }
 0xb45   :  { %1117 = vrot.lane.b32.xlu1 %v3137_v48, %s3245_s0 }
 0xb46   :  { %v3139_v54 = vpop.eup %3138 }
 0xb47   :  { %v1111_v55 = vadd.f32 1.0, %v3139_v54 }
 0xb49   :  { %3140 = vrcp.f32 %v1111_v55 }
 0xb4a   :  { %3142 = vpow2.f32 %v1219_v57 }
 0xb56   :  { %v3141_v58 = vpop.eup %3140 }
 0xb57   :  { %v3143_v62 = vpop.eup %3142  ;;  %v1115_v12 = vmul.f32 %v3141_v58, %v3567_v63 }
 0xbb7   :  { %v1118_v59 = vpop.permute.xlu1 %1117 }
 0xbb8   :  { %v1120_v60 = vmul.f32 %v3141_v58, %v1118_v59 }
 0xbba   :  { %1122 = vrot.lane.b32.xlu0 %v1120_v60, %s3246_s24 }
 0xbbe   :  { %1302 = vrot.lane.b32.xlu0 %v3143_v62, %s3247_s25 }
 0xc2c   :  { %v1123_v20 = vpop.permute.xlu0 %1122 }
 0xc2d   :  { %v3632_v21 = vadd.f32 %v1123_v20, %v1115_v12 }
 0xc2f   :  { %3144 = vtanh.f32 %v3632_v21 }
 0xc30   :  { %v1303_v24 = vpop.permute.xlu0 %1302 }
 0xc3c   :  { %v3145_v22 = vpop.eup %3144 }
 0xc3d   :  { %1128 = vrot.lane.b32.xlu1 %v3145_v22, %s3245_s0 }
 0xcaf   :  { %v1129_v23 = vpop.permute.xlu1 %1128 }
 0xcb0   :  { %v1131_v61 = vmul.f32 %v3141_v58, %v1129_v23 }
 0xcb2   :  { %v1305_v25 = vmul.f32 %v1303_v24, %v1131_v61 }
 0xcb4   :  { %1307 = vrot.lane.b32.xlu1 %v1305_v25, %s3246_s24 }
 0xcb8   :  { %1221 = vrot.lane.b32.xlu1 %v3395_v13, %s3248_s26 }
 0xd26   :  { %v1308_v28 = vpop.permute.xlu1 %1307 }
 0xd27   :  { %2814 = vmatmul.mubr.msk.f32.vlgmr.msra.gmra.mxu0 %vm174_vm2, %v1308_v28 }
 0xd28   :  { %3020 = vmatpush3.msra.mxu0 %v3317_v0  ;;  %3023 = vmatprep.mubr.msk.f32.mxu0 %vm3242_vm0, %v3241_v1 }
 0xd29   :  { %3021 = vmatprep.subr.mxu0 %v3241_v1 }
 0xd2a   :  { %3022 = vmatpush3.msra.mxu0 %v3323_v2  ;;  %v1222_v39 = vpop.permute.xlu1 %1221 }
 0xd2b   :  { %1692 = vmatprep.subr.mxu0 %v3344_v4 }
 0xde7   :  { %v1377_v63 = vpop.f32.mrf.mxu0 }
 0xde8   :  { %v1382_v29 = vadd.f32 %v3458_v32, %v1377_v63 }
 0xde9   :  { %v1379_v48 = vpop.f32.mrf.mxu0 }
 0xdea   :  { %1384 = vrot.lane.b32.xlu0 %v1382_v29, %s3249_s27 }
 0xdee   :  { %1224 = vrot.lane.b32.xlu0 %v3404_v15, %s3247_s25 }
 0xdf2   :  { %1500 = vrot.lane.b32.xlu0 %v3331_v3, %s3245_s0 }
 0xe5c   :  { %v3652_v30 = vpop.permute.xlu0 %1384 }
 0xe5d   :  { %v1387_v34 = vmul.f32 %v3652_v30, %v3461_v33 }
 0xe5f   :  { %v1388_v36 = vadd.f32 %v1387_v34, %v3404_v15  ;;  %1390 = vrot.lane.b32.xlu1 %v1387_v34, %s3248_s26 }
 0xe60   :  { %v1225_v31 = vpop.permute.xlu0 %1224 }
 0xe61   :  { %v3659_v40 = vsel %vm2749_vm3, %v3595_v37, %v1388_v36  ;;  %v1227_v41 = vsel %vm89_vm1, %v1222_v39, %v1225_v31 }
 0xe62   :  { %3010 = vmatmul.mubr.msk.f32.vlgmr.msra.gmra.mxu1 %vm174_vm2, %v1227_v41 }
 0xe63   :  { %3013 = vmatpush3.msra.mxu1 %v3400_v14  ;;  %3016 = vmatprep.mubr.msk.f32.mxu1 %vm3242_vm0, %v3241_v1 }
 0xe64   :  { %3014 = vmatprep.subr.mxu1 %v3241_v1  ;;  %v1501_v44 = vpop.permute.xlu0 %1500 }
 0xe65   :  { %3015 = vmatpush3.msra.mxu1 %v3410_v16  ;;  %3024 = vmatmul.mubr.msk.f32.vlgmr.msra.gmra.mxu0 %vm89_vm1, %v1501_v44 }
 0xe66   :  { %3026 = vmatprep.subr.mxu1 %v3241_v1  ;;  %1693 = vmatpush1.msra.mxu0 %v3350_v5 }
 0xe67   :  { %1732 = vmatprep.mubr.f32.mxu0 %v3241_v1  ;;  %1694 = vmatprep.subr.mxu0 %v3356_v6 }
 0xe68   :  { %1695 = vmatpush1.msra.mxu0 %v3362_v7 }
 0xe69   :  { %1696 = vmatprep.subr.mxu0 %v3368_v8 }
 0xe6a   :  { %1697 = vmatpush1.msra.mxu0 %v3374_v9 }
 0xe6b   :  { %1698 = vmatprep.subr.mxu0 %v3380_v10 }
 0xe6c   :  { %1699 = vmatpush1.msra.mxu0 %v3386_v11 }
 0xe6d   :  { %3044 = vmatprep.subr.mxu0 %v3241_v1 }
 0xed1   :  { %v1391_v42 = vpop.permute.xlu1 %1390 }
 0xed2   :  { %3017 = vmatmul.mubr.msk.f32.vlgmr.msra.gmra.mxu1 %vm89_vm1, %v1391_v42 }
 0xed3   :  { %3027 = vmatpush3.msra.mxu1 %v3400_v14  ;;  %3034 = vmatprep.mubr.msk.f32.mxu1 %vm3242_vm0, %v3241_v1 }
 0xed4   :  { %3028 = vmatprep.subr.mxu1 %v3241_v1 }
 0xed5   :  { %3029 = vmatpush3.msra.mxu1 %v3410_v16 }
 0xed6   :  { %3030 = vmatprep.subr.mxu1 %v3241_v1 }
 0xed7   :  { %3031 = vmatpush3.msra.mxu1 %v3416_v17 }
 0xed8   :  { %3032 = vmatprep.subr.mxu1 %v3241_v1 }
 0xed9   :  { %3033 = vmatpush3.msra.mxu1 %v3425_v18 }
 0xeda   :  { %3037 = vmatprep.subr.mxu1 %v3241_v1 }
 0xf22   :  { %v1297_v37 = vpop.f32.mrf.mxu1 }
 0xf23   :  { %v1298_v45 = vadd.f32 %v3495_v38, %v1297_v37 }
 0xf24   :  { %v3011_v43 = vpop.f32.mrf.mxu1 }
 0xf25   :  { %v1570_v52 = vpop.f32.mrf.mxu0 }
 0xf26   :  { %v1571_v55 = vadd.f32 %v3434_v19, %v1570_v52 }
 0xf27   :  { %v3025_v53 = vpop.f32.mrf.mxu0 }
 0xf28   :  { %v1574_v56 = vmax.f32 %v1571_v55, 0.0 }
 0xf2a   :  { %v1575_v59 = vsub.f32 0.0, %v1574_v56 }
 0xf2c   :  { %v1576_v60 = vmul.f32 1.442695, %v1575_v59 }
 0xf92   :  { %v1460_v46 = vpop.f32.mrf.mxu1 }
 0xf93   :  { %v1461_v47 = vadd.f32 %v1460_v46, %v1298_v45 }
 0xf94   :  { %v3018_v49 = vpop.f32.mrf.mxu1 }
 0xf95   :  { %v1464_v50 = vadd.f32 %v1461_v47, %v1379_v48 }
 0xf97   :  { %3146 = vtanh.f32 %v1464_v50  ;;  %v2816_v54 = vmul.f32 -1.442695, %v1464_v50 }
 0xf99   :  { %3148 = vpow2.f32 %v2816_v54 }
 0xfa4   :  { %v3147_v51 = vpop.eup %3146 }
 0xfa5   :  { %1474 = vrot.lane.b32.xlu1 %v3147_v51, %s3245_s0 }
 0xfa6   :  { %v3149_v57 = vpop.eup %3148 }
 0xfa7   :  { %v1468_v58 = vadd.f32 1.0, %v3149_v57 }
 0xfa9   :  { %3150 = vrcp.f32 %v1468_v58 }
 0xfaa   :  { %3152 = vpow2.f32 %v1576_v60 }
 0xfb6   :  { %v3151_v62 = vpop.eup %3150 }
 0xfb7   :  { %v3153_v22 = vpop.eup %3152  ;;  %v1472_v23 = vmul.f32 %v3151_v62, %v3632_v21 }
0x1017   :  { %v1475_v12 = vpop.permute.xlu1 %1474 }
0x1018   :  { %v1477_v20 = vmul.f32 %v3151_v62, %v1475_v12 }
0x101a   :  { %1479 = vrot.lane.b32.xlu0 %v1477_v20, %s3246_s24 }
0x101e   :  { %1659 = vrot.lane.b32.xlu0 %v3153_v22, %s3247_s25 }
0x108c   :  { %v1480_v24 = vpop.permute.xlu0 %1479 }
0x108d   :  { %v3696_v61 = vadd.f32 %v1480_v24, %v1472_v23 }
0x108f   :  { %3154 = vtanh.f32 %v3696_v61 }
0x1090   :  { %v1660_v63 = vpop.permute.xlu0 %1659 }
0x109c   :  { %v3155_v25 = vpop.eup %3154 }
0x109d   :  { %1485 = vrot.lane.b32.xlu1 %v3155_v25, %s3245_s0 }
0x110f   :  { %v1486_v28 = vpop.permute.xlu1 %1485 }
0x1110   :  { %v1488_v29 = vmul.f32 %v3151_v62, %v1486_v28 }
0x1112   :  { %v1662_v34 = vmul.f32 %v1660_v63, %v1488_v29 }
0x1114   :  { %1664 = vrot.lane.b32.xlu1 %v1662_v34, %s3246_s24 }
0x1118   :  { %1578 = vrot.lane.b32.xlu1 %v3395_v13, %s3245_s0 }
0x1186   :  { %v1665_v39 = vpop.permute.xlu1 %1664 }
0x1187   :  { %2820 = vmatmul.mubr.msk.f32.vlgmr.msra.gmra.mxu0 %vm174_vm2, %v1665_v39 }
0x1188   :  { %3045 = vmatpush3.msra.mxu0 %v3317_v0  ;;  %3048 = vmatprep.mubr.msk.f32.mxu0 %vm3242_vm0, %v3241_v1 }
0x1189   :  { %3046 = vmatprep.subr.mxu0 %v3241_v1 }
0x118a   :  { %3047 = vmatpush3.msra.mxu0 %v3323_v2  ;;  %v1579_v42 = vpop.permute.xlu1 %1578 }
0x118b   :  { %2049 = vmatprep.subr.mxu0 %v3344_v4 }
0x1247   :  { %v1734_v21 = vpop.f32.mrf.mxu0 }
0x1248   :  { %v1739_v36 = vadd.f32 %v3458_v32, %v1734_v21 }
0x1249   :  { %v1736_v51 = vpop.f32.mrf.mxu0 }
0x124a   :  { %1741 = vrot.lane.b32.xlu0 %v1739_v36, %s3245_s0 }
0x124e   :  { %1581 = vrot.lane.b32.xlu0 %v3404_v15, %s3248_s26 }
0x1252   :  { %1857 = vrot.lane.b32.xlu0 %v3331_v3, %s3249_s27 }
0x12bc   :  { %v3716_v31 = vpop.permute.xlu0 %1741 }
0x12bd   :  { %v1744_v41 = vmul.f32 %v3716_v31, %v3461_v33 }
0x12bf   :  { %v1745_v37 = vadd.f32 %v1744_v41, %v3404_v15  ;;  %1747 = vrot.lane.b32.xlu1 %v1744_v41, %s3245_s0  ;;  %v3812_v41 = vld [vmem:[%s3998_s8 + $0x30] sm:$0xff] }
0x12c0   :  { %v1582_v43 = vpop.permute.xlu0 %1581 }
0x12c1   :  { %v3723_v44 = vsel %vm2751_vm4, %v3659_v40, %v1745_v37  ;;  %v1584_v45 = vsel %vm89_vm1, %v1579_v42, %v1582_v43  ;;  %v3837_v42 = vld [vmem:[%s3998_s8 + $0x10] sm:$0xff]  ;;  %v3843_v37 = vld [vmem:[%s3998_s8 + $0x8] sm:$0xff]  ;;  %v3849_v43 = vld [vmem:[%s3998_s8] sm:$0xff] }
0x12c2   :  { %3035 = vmatmul.mubr.msk.f32.vlgmr.msra.gmra.mxu1 %vm174_vm2, %v1584_v45 }
0x12c3   :  { %3038 = vmatpush3.msra.mxu1 %v3400_v14  ;;  %3041 = vmatprep.mubr.msk.f32.mxu1 %vm3242_vm0, %v3241_v1 }
0x12c4   :  { %3039 = vmatprep.subr.mxu1 %v3241_v1  ;;  %v1858_v48 = vpop.permute.xlu0 %1857 }
0x12c5   :  { %3040 = vmatpush3.msra.mxu1 %v3410_v16  ;;  %3049 = vmatmul.mubr.msk.f32.vlgmr.msra.gmra.mxu0 %vm89_vm1, %v1858_v48 }
0x12c6   :  { %3051 = vmatprep.subr.mxu1 %v3241_v1  ;;  %2050 = vmatpush1.msra.mxu0 %v3350_v5 }
0x12c7   :  { %2089 = vmatprep.mubr.f32.mxu0 %v3241_v1  ;;  %2051 = vmatprep.subr.mxu0 %v3356_v6 }
0x12c8   :  { %2052 = vmatpush1.msra.mxu0 %v3362_v7 }
0x12c9   :  { %2053 = vmatprep.subr.mxu0 %v3368_v8 }
0x12ca   :  { %2054 = vmatpush1.msra.mxu0 %v3374_v9 }
0x12cb   :  { %2055 = vmatprep.subr.mxu0 %v3380_v10 }
0x12cc   :  { %2056 = vmatpush1.msra.mxu0 %v3386_v11 }
0x12cd   :  { %3069 = vmatprep.subr.mxu0 %v3241_v1 }
0x1331   :  { %v1748_v46 = vpop.permute.xlu1 %1747 }
0x1332   :  { %3042 = vmatmul.mubr.msk.f32.vlgmr.msra.gmra.mxu1 %vm89_vm1, %v1748_v46 }
0x1333   :  { %3052 = vmatpush3.msra.mxu1 %v3400_v14  ;;  %3059 = vmatprep.mubr.msk.f32.mxu1 %vm3242_vm0, %v3241_v1 }
0x1334   :  { %3053 = vmatprep.subr.mxu1 %v3241_v1 }
0x1335   :  { %3054 = vmatpush3.msra.mxu1 %v3410_v16 }
0x1336   :  { %3055 = vmatprep.subr.mxu1 %v3241_v1 }
0x1337   :  { %3056 = vmatpush3.msra.mxu1 %v3416_v17 }
0x1338   :  { %3057 = vmatprep.subr.mxu1 %v3241_v1 }
0x1339   :  { %3058 = vmatpush3.msra.mxu1 %v3425_v18 }
0x133a   :  { %3062 = vmatprep.subr.mxu1 %v3241_v1 }
0x1382   :  { %v1654_v40 = vpop.f32.mrf.mxu1 }
0x1383   :  { %v1655_v49 = vadd.f32 %v3495_v38, %v1654_v40 }
0x1384   :  { %v3036_v47 = vpop.f32.mrf.mxu1 }
0x1385   :  { %v1927_v7 = vpop.f32.mrf.mxu0 }
0x1386   :  { %v1928_v10 = vadd.f32 %v3434_v19, %v1927_v7 }
0x1387   :  { %v3050_v8 = vpop.f32.mrf.mxu0 }
0x1388   :  { %v1931_v11 = vmax.f32 %v1928_v10, 0.0 }
0x138a   :  { %v1932_v56 = vsub.f32 0.0, %v1931_v11 }
0x138c   :  { %v1933_v57 = vmul.f32 1.442695, %v1932_v56 }
0x13f2   :  { %v1817_v50 = vpop.f32.mrf.mxu1 }
0x13f3   :  { %v1818_v5 = vadd.f32 %v1817_v50, %v1655_v49 }
0x13f4   :  { %v3043_v52 = vpop.f32.mrf.mxu1 }
0x13f5   :  { %v1821_v53 = vadd.f32 %v1818_v5, %v1736_v51  ;;  %v3858_v52 = vld [vmem:[%s3995_s5] ss:$0 sm:$0xff]  ;;  %s2817_s5 = sld [smem:[#allocation2 + $0x3]] }
0x13f7   :  { %3156 = vtanh.f32 %v1821_v53  ;;  %v2822_v9 = vmul.f32 -1.442695, %v1821_v53 }
0x13f9   :  { %3158 = vpow2.f32 %v2822_v9 }
0x1404   :  { %v3157_v6 = vpop.eup %3156 }
0x1405   :  { %1831 = vrot.lane.b32.xlu1 %v3157_v6, %s3245_s0 }
0x1406   :  { %v3159_v54 = vpop.eup %3158 }
0x1407   :  { %v1825_v55 = vadd.f32 1.0, %v3159_v54 }
0x1409   :  { %3160 = vrcp.f32 %v1825_v55 }
0x140a   :  { %3162 = vpow2.f32 %v1933_v57 }
0x1416   :  { %v3161_v58 = vpop.eup %3160 }
0x1417   :  { %v3163_v62 = vpop.eup %3162  ;;  %v1829_v12 = vmul.f32 %v3161_v58, %v3696_v61 }
0x1477   :  { %v1832_v59 = vpop.permute.xlu1 %1831 }
0x1478   :  { %v1834_v60 = vmul.f32 %v3161_v58, %v1832_v59 }
0x147a   :  { %1836 = vrot.lane.b32.xlu0 %v1834_v60, %s3246_s24 }
0x147e   :  { %2016 = vrot.lane.b32.xlu0 %v3163_v62, %s3247_s25 }
0x14ec   :  { %v1837_v20 = vpop.permute.xlu0 %1836 }
0x14ed   :  { %v3760_v22 = vadd.f32 %v1837_v20, %v1829_v12 }
0x14ef   :  { %3164 = vtanh.f32 %v3760_v22 }
0x14f0   :  { %v2017_v24 = vpop.permute.xlu0 %2016 }
0x14fc   :  { %v3165_v19 = vpop.eup %3164 }
0x14fd   :  { %1842 = vrot.lane.b32.xlu1 %v3165_v19, %s3245_s0  ;;  %v3872_v19 = vld [vmem:[%s3992_s2] sm:$0xff] }
0x156f   :  { %v1843_v23 = vpop.permute.xlu1 %1842 }
0x1570   :  { %v1845_v25 = vmul.f32 %v3161_v58, %v1843_v23  ;;  %v3195_v23 = vld [vmem:[%s3994_s4 + $0x8] sm:$0xff] }
0x1572   :  { %v2019_v28 = vmul.f32 %v2017_v24, %v1845_v25  ;;  %v3196_v24 = vld [vmem:[%s3994_s4] sm:$0xff] }
0x1574   :  { %2021 = vrot.lane.b32.xlu1 %v2019_v28, %s3246_s24  ;;  %v3889_v28 = vld [vmem:[%s3999_s9] ss:$0 sm:$0xff] }
0x1578   :  { %1935 = vrot.lane.b32.xlu1 %v3395_v13, %s3249_s27 }
0x15e6   :  { %v2022_v63 = vpop.permute.xlu1 %2021 }
0x15e7   :  { %2826 = vmatmul.mubr.msk.f32.vlgmr.msra.gmra.mxu0 %vm174_vm2, %v2022_v63 }
0x15e8   :  { %3070 = vmatpush3.msra.mxu0 %v3317_v0  ;;  %3073 = vmatprep.mubr.msk.f32.mxu0 %vm3242_vm0, %v3241_v1 }
0x15e9   :  { %3071 = vmatprep.subr.mxu0 %v3241_v1 }
0x15ea   :  { %3072 = vmatpush3.msra.mxu0 %v3323_v2  ;;  %v1936_v2 = vpop.permute.xlu1 %1935 }
0x15eb   :  { %2406 = vmatprep.subr.mxu0 %v3344_v4 }
0x16a7   :  { %v2091_v61 = vpop.f32.mrf.mxu0 }
0x16a8   :  { %v2096_v29 = vadd.f32 %v3458_v32, %v2091_v61  ;;  %v3198_v61 = vld [vmem:[%s3993_s3] sm:$0xff] }
0x16a9   :  { %v2093_v40 = vpop.f32.mrf.mxu0 }
0x16aa   :  { %2098 = vrot.lane.b32.xlu0 %v2096_v29, %s3248_s26 }
0x16ae   :  { %1938 = vrot.lane.b32.xlu0 %v3404_v15, %s3245_s0 }
0x16b2   :  { %2214 = vrot.lane.b32.xlu0 %v3331_v3, %s3246_s24 }
0x171c   :  { %v3780_v0 = vpop.permute.xlu0 %2098 }
0x171d   :  { %v2101_v13 = vmul.f32 %v3780_v0, %v3461_v33 }
0x171f   :  { %v2102_v4 = vadd.f32 %v2101_v13, %v3404_v15  ;;  %2104 = vrot.lane.b32.xlu1 %v2101_v13, %s3249_s27 }
0x1720   :  { %v1939_v32 = vpop.permute.xlu0 %1938 }
0x1721   :  { %v3787_v34 = vsel %vm2753_vm5, %v3723_v44, %v2102_v4  ;;  %v1941_v39 = vsel %vm89_vm1, %v1936_v2, %v1939_v32 }
0x1722   :  { %3060 = vmatmul.mubr.msk.f32.vlgmr.msra.gmra.mxu1 %vm174_vm2, %v1941_v39 }
0x1723   :  { %3063 = vmatpush3.msra.mxu1 %v3400_v14  ;;  %3066 = vmatprep.mubr.msk.f32.mxu1 %vm3242_vm0, %v3241_v1 }
0x1724   :  { %3064 = vmatprep.subr.mxu1 %v3241_v1 }
0x1725   :  { %3065 = vmatpush3.msra.mxu1 %v3410_v16 }
0x1726   :  { %3076 = vmatprep.subr.mxu1 %v3241_v1 }
0x1791   :  { %v2105_v3 = vpop.permute.xlu1 %2104 }
0x1792   :  { %3067 = vmatmul.mubr.msk.f32.vlgmr.msra.gmra.mxu1 %vm89_vm1, %v2105_v3 }
0x1793   :  { %3077 = vmatpush3.msra.mxu1 %v3400_v14  ;;  %3084 = vmatprep.mubr.msk.f32.mxu1 %vm3242_vm0, %v3241_v1  ;;  %v2215_v14 = vpop.permute.xlu0 %2214 }
0x1794   :  { %3078 = vmatprep.subr.mxu1 %v3241_v1  ;;  %3074 = vmatmul.mubr.msk.f32.vlgmr.msra.gmra.mxu0 %vm89_vm1, %v2215_v14 }
0x1795   :  { %3079 = vmatpush3.msra.mxu1 %v3410_v16  ;;  %2407 = vmatpush1.msra.mxu0 %v3812_v41  ;;  %v3819_v16 = vld [vmem:[%s3998_s8 + $0x28] sm:$0xff] }
0x1796   :  { %3080 = vmatprep.subr.mxu1 %v3241_v1  ;;  %2446 = vmatprep.mubr.f32.mxu0 %v3241_v1 }
0x1797   :  { %3081 = vmatpush3.msra.mxu1 %v3416_v17  ;;  %2408 = vmatprep.subr.mxu0 %v3819_v16  ;;  %v3825_v17 = vld [vmem:[%s3998_s8 + $0x20] sm:$0xff] }
0x1798   :  { %3082 = vmatprep.subr.mxu1 %v3241_v1  ;;  %2409 = vmatpush1.msra.mxu0 %v3825_v17 }
0x1799   :  { %3083 = vmatpush3.msra.mxu1 %v3425_v18  ;;  %v3831_v18 = vld [vmem:[%s3998_s8 + $0x18] sm:$0xff] }
0x179a   :  { %3087 = vmatprep.subr.mxu1 %v3241_v1  ;;  %2410 = vmatprep.subr.mxu0 %v3831_v18 }
0x179b   :  { %2411 = vmatpush1.msra.mxu0 %v3837_v42 }
0x179c   :  { %2412 = vmatprep.subr.mxu0 %v3843_v37 }
0x179d   :  { %2413 = vmatpush1.msra.mxu0 %v3849_v43 }
0x179e   :  { %3094 = vmatprep.subr.mxu0 %v3241_v1 }
0x17e2   :  { %v2011_v21 = vpop.f32.mrf.mxu1 }
0x17e3   :  { %v2012_v44 = vadd.f32 %v3495_v38, %v2011_v21  ;;  %v3199_v21 = vld [vmem:[%s3996_s6 + $0x18] sm:$0xff] }
0x17e4   :  { %v3061_v36 = vpop.f32.mrf.mxu1 }
0x17e5   :  { %v3200_v36 = vld [vmem:[%s3996_s6 + $0x10] sm:$0xff] }
0x1852   :  { %v2174_v45 = vpop.f32.mrf.mxu1 }
0x1853   :  { %v2175_v46 = vadd.f32 %v2174_v45, %v2012_v44 }
0x1854   :  { %v3068_v47 = vpop.f32.mrf.mxu1  ;;  %v2284_v50 = vpop.f32.mrf.mxu0 }
0x1855   :  { %v2178_v48 = vadd.f32 %v2175_v46, %v2093_v40  ;;  %v2285_v38 = vadd.f32 %v3858_v52, %v2284_v50 }
0x1856   :  { %v3075_v5 = vpop.f32.mrf.mxu0 }
0x1857   :  { %3166 = vtanh.f32 %v2178_v48  ;;  %v2828_v51 = vmul.f32 -1.442695, %v2178_v48  ;;  %v2288_v53 = vmax.f32 %v2285_v38, 0.0 }
0x1859   :  { %3168 = vpow2.f32 %v2828_v51  ;;  %v2289_v8 = vsub.f32 0.0, %v2288_v53 }
0x185b   :  { %v2290_v9 = vmul.f32 1.442695, %v2289_v8 }
0x1864   :  { %v3167_v49 = vpop.eup %3166 }
0x1865   :  { %2188 = vrot.lane.b32.xlu1 %v3167_v49, %s3245_s0 }
0x1866   :  { %v3169_v6 = vpop.eup %3168 }
0x1867   :  { %v2182_v7 = vadd.f32 1.0, %v3169_v6 }
0x1869   :  { %3170 = vrcp.f32 %v2182_v7 }
0x186a   :  { %3172 = vpow2.f32 %v2290_v9 }
0x1876   :  { %v3171_v10 = vpop.eup %3170 }
0x1877   :  { %v3173_v55 = vpop.eup %3172  ;;  %v2186_v56 = vmul.f32 %v3171_v10, %v3760_v22 }
0x18d7   :  { %v2189_v11 = vpop.permute.xlu1 %2188 }
0x18d8   :  { %v2191_v54 = vmul.f32 %v3171_v10, %v2189_v11 }
0x18da   :  { %2193 = vrot.lane.b32.xlu0 %v2191_v54, %s3246_s24 }
0x18de   :  { %2373 = vrot.lane.b32.xlu0 %v3173_v55, %s3247_s25  ;;  %v3944_v55 = vld [vmem:[%s3991_s1] sm:$0xff]  ;;  %s2829_s1 = sld [smem:[#allocation2 + $0x5]] }
0x194c   :  { %v2194_v57 = vpop.permute.xlu0 %2193 }
0x194d   :  { %v3864_v58 = vadd.f32 %v2194_v57, %v2186_v56  ;;  %v775_v56 = vsub.f32 %v3944_v55, %v3529_v27 }
0x194f   :  { %3174 = vtanh.f32 %v3864_v58  ;;  %v776_v57 = vand.u32 2147483647, %v775_v56 }
0x1950   :  { %v2374_v62 = vpop.permute.xlu0 %2373 }
0x195c   :  { %v3175_v59 = vpop.eup %3174 }
0x195d   :  { %2199 = vrot.lane.b32.xlu1 %v3175_v59, %s3245_s0  ;;  %v1489_v59 = vsub.f32 %v3944_v55, %v3652_v30  ;;  %v1493_v30 = vstv %s2817_s5 }
0x19cf   :  { %v2200_v60 = vpop.permute.xlu1 %2199 }
0x19d0   :  { %v2202_v12 = vmul.f32 %v3171_v10, %v2200_v60 }
0x19d2   :  { %v2376_v20 = vmul.f32 %v2374_v62, %v2202_v12  ;;  %v777_v12 = vmul.f32 %v3872_v19, %v776_v57 }
0x19d4   :  { %2378 = vrot.lane.b32.xlu1 %v2376_v20, %s3246_s24  ;;  %v1490_v20 = vand.u32 2147483647, %v1489_v59 }
0x19d6   :  { %v1491_v27 = vmul.f32 %v3872_v19, %v1490_v20 }
0x19d8   :  { %2292 = vrot.lane.b32.xlu1 %v3872_v19, %s3246_s24 }
0x1a46   :  { %v2379_v22 = vpop.permute.xlu1 %2378 }
0x1a47   :  { %2832 = vmatmul.mubr.msk.f32.vlgmr.msra.gmra.mxu0 %vm174_vm2, %v2379_v22  ;;  %v2203_v22 = vsub.f32 %v3944_v55, %v3780_v0 }
0x1a48   :  { %3095 = vmatpush3.msra.mxu0 %v3195_v23  ;;  %3098 = vmatprep.mubr.msk.f32.mxu0 %vm3242_vm0, %v3241_v1 }
0x1a49   :  { %3096 = vmatprep.subr.mxu0 %v3241_v1 }
0x1a4a   :  { %3097 = vmatpush3.msra.mxu0 %v3196_v24  ;;  %v2293_v2 = vpop.permute.xlu1 %2292  ;;  %v779_v24 = vstv %s2805_s30 }
0x1b07   :  { %v2448_v25 = vpop.f32.mrf.mxu0 }
0x1b08   :  { %v2453_v63 = vadd.f32 %v3889_v28, %v2448_v25  ;;  %v2204_v25 = vand.u32 2147483647, %v2203_v22 }
0x1b09   :  { %v2450_v40 = vpop.f32.mrf.mxu0 }
0x1b0a   :  { %2455 = vrot.lane.b32.xlu0 %v2453_v63, %s3247_s25  ;;  %v780_v63 = vmul.f32 %v779_v24, %v777_v12 }
0x1b0e   :  { %2295 = vrot.lane.b32.xlu0 %v3404_v15, %s3249_s27 }
0x1b12   :  { %2571 = vrot.lane.b32.xlu0 %v3198_v61, %s3243_s14  ;;  %v2205_v61 = vmul.f32 %v3872_v19, %v2204_v25 }
0x1b7c   :  { %v3899_v29 = vpop.permute.xlu0 %2455 }
0x1b7d   :  { %v2458_v13 = vmul.f32 %v3899_v29, %v3461_v33 }
0x1b7f   :  { %v2459_v4 = vadd.f32 %v2458_v13, %v3404_v15  ;;  %2461 = vrot.lane.b32.xlu1 %v2458_v13, %s3246_s24  ;;  %v1494_v13 = vmul.f32 %v1493_v30, %v1491_v27 }
0x1b80   :  { %v2296_v32 = vpop.permute.xlu0 %2295 }
0x1b81   :  { %v3906_v39 = vsel %vm2755_vm6, %v3787_v34, %v2459_v4  ;;  %v2298_v3 = vsel %vm89_vm1, %v2293_v2, %v2296_v32  ;;  %v3201_v34 = vld [vmem:[%s3998_s8 + $0x38] sm:$0xff]  ;;  %v2207_v2 = vstv %s2829_s1  ;;  %v1132_v32 = vsub.f32 %v3944_v55, %v3587_v26 }
0x1b82   :  { %3085 = vmatmul.mubr.msk.f32.vlgmr.msra.gmra.mxu1 %vm174_vm2, %v2298_v3  ;;  %v2208_v4 = vmul.f32 %v2207_v2, %v2205_v61 }
0x1b83   :  { %3088 = vmatpush3.msra.mxu1 %v3199_v21  ;;  %3091 = vmatprep.mubr.msk.f32.mxu1 %vm3242_vm0, %v3241_v1  ;;  %v1133_v3 = vand.u32 2147483647, %v1132_v32  ;;  %v1846_v21 = vsub.f32 %v3944_v55, %v3716_v31  ;;  %v1850_v31 = vstv %s2823_s13 }
0x1b84   :  { %3089 = vmatprep.subr.mxu1 %v3241_v1  ;;  %v2572_v46 = vpop.permute.xlu0 %2571 }
0x1b85   :  { %3090 = vmatpush3.msra.mxu1 %v3200_v36  ;;  %3099 = vmatmul.mubr.msk.f32.vlgmr.msra.gmra.mxu0 %vm89_vm1, %v2572_v46 }
0x1b86   :  { %2683 = vmatprep.subr.mxu1 %v3201_v34  ;;  %v1134_v34 = vmul.f32 %v3872_v19, %v1133_v3 }
0x1bf1   :  { %v2462_v14 = vpop.permute.xlu1 %2461 }
0x1bf2   :  { %3092 = vmatmul.mubr.msk.f32.vlgmr.msra.gmra.mxu1 %vm89_vm1, %v2462_v14  ;;  %v1847_v14 = vand.u32 2147483647, %v1846_v21 }
0x1bf3   :  { %2684 = vmatpush1.msra.mxu1 %v3812_v41  ;;  %2723 = vmatprep.mubr.f32.mxu1 %v3241_v1  ;;  %v3202_v1 = vld [vmem:[%s3997_s7] ss:$0 sm:$0xff] }
0x1bf4   :  { %2685 = vmatprep.subr.mxu1 %v3819_v16  ;;  %v1848_v26 = vmul.f32 %v3872_v19, %v1847_v14 }
0x1bf5   :  { %2686 = vmatpush1.msra.mxu1 %v3825_v17 }
0x1bf6   :  { %2687 = vmatprep.subr.mxu1 %v3831_v18 }
0x1bf7   :  { %2688 = vmatpush1.msra.mxu1 %v3837_v42 }
0x1bf8   :  { %2689 = vmatprep.subr.mxu1 %v3843_v37 }
0x1bf9   :  { %2690 = vmatpush1.msra.mxu1 %v3849_v43 }
0x1c42   :  { %v2368_v44 = vpop.f32.mrf.mxu1 }
0x1c43   :  { %v2369_v41 = vadd.f32 %v3202_v1, %v2368_v44  ;;  %v2560_v44 = vsub.f32 %v3944_v55, %v3899_v29  ;;  %v1136_v1 = vstv %s2811_s12 }
0x1c44   :  { %v3086_v45 = vpop.f32.mrf.mxu1 }
0x1c45   :  { %v2641_v37 = vpop.f32.mrf.mxu0 }
0x1c46   :  { %v2642_v49 = vadd.f32 %v3858_v52, %v2641_v37 }
0x1c47   :  { %v3100_v43 = vpop.f32.mrf.mxu0 }
0x1c48   :  { %v2645_v50 = vmax.f32 %v2642_v49, 0.0 }
0x1c4a   :  { %v2646_v38 = vsub.f32 0.0, %v2645_v50 }
0x1c4c   :  { %v2647_v53 = vmul.f32 1.442695, %v2646_v38 }
0x1cb2   :  { %v2531_v16 = vpop.f32.mrf.mxu1 }
0x1cb3   :  { %v2532_v17 = vadd.f32 %v2531_v16, %v2369_v41  ;;  %v2561_v41 = vand.u32 2147483647, %v2560_v44  ;;  %v1137_v16 = vmul.f32 %v1136_v1, %v1134_v34 }
0x1cb4   :  { %v3093_v18 = vpop.f32.mrf.mxu1 }
0x1cb5   :  { %v2535_v47 = vadd.f32 %v2532_v17, %v2450_v40  ;;  %v2562_v17 = vmul.f32 %v3872_v19, %v2561_v41  ;;  %v1851_v40 = vmul.f32 %v1850_v31, %v1848_v26 }
0x1cb7   :  { %3176 = vtanh.f32 %v2535_v47  ;;  %v2834_v48 = vmul.f32 -1.442695, %v2535_v47 }
0x1cb9   :  { %3178 = vpow2.f32 %v2834_v48 }
0x1cc4   :  { %v3177_v42 = vpop.eup %3176 }
0x1cc5   :  { %2545 = vrot.lane.b32.xlu1 %v3177_v42, %s3245_s0 }
0x1cc6   :  { %v3179_v5 = vpop.eup %3178 }
0x1cc7   :  { %v2539_v51 = vadd.f32 1.0, %v3179_v5 }
0x1cc9   :  { %3180 = vrcp.f32 %v2539_v51 }
0x1cca   :  { %3182 = vpow2.f32 %v2647_v53 }
0x1cd6   :  { %v3181_v6 = vpop.eup %3180 }
0x1cd7   :  { %v3183_v9 = vpop.eup %3182  ;;  %v2543_v10 = vmul.f32 %v3181_v6, %v3864_v58 }
0x1d37   :  { %v2546_v7 = vpop.permute.xlu1 %2545 }
0x1d38   :  { %v2548_v8 = vmul.f32 %v3181_v6, %v2546_v7 }
0x1d3a   :  { %2550 = vrot.lane.b32.xlu0 %v2548_v8, %s3246_s24 }
0x1d3e   :  { %2650 = vrot.lane.b32.xlu0 %v3183_v9, %s3247_s25 }
0x1dac   :  { %v2551_v11 = vpop.permute.xlu0 %2550 }
0x1dad   :  { %v2553_v54 = vadd.f32 %v2551_v11, %v2543_v10 }
0x1daf   :  { %3184 = vtanh.f32 %v2553_v54 }
0x1db0   :  { %v2651_v60 = vpop.permute.xlu0 %2650 }
0x1dbc   :  { %v3185_v52 = vpop.eup %3184 }
0x1dbd   :  { %2556 = vrot.lane.b32.xlu1 %v3185_v52, %s3245_s0 }
0x1e2f   :  { %v2557_v58 = vpop.permute.xlu1 %2556 }
0x1e30   :  { %v2559_v62 = vmul.f32 %v3181_v6, %v2557_v58 }
0x1e32   :  { %v2653_v23 = vmul.f32 %v2651_v60, %v2559_v62 }
0x1e34   :  { %2655 = vrot.lane.b32.xlu1 %v2653_v23, %s3246_s24 }
0x1e38   :  { %782 = vrot.lane.b32.xlu1 %v780_v63, %s3244_s19 }
0x1e3c   :  { %1496 = vrot.lane.b32.xlu1 %v1494_v13, %s3248_s26  ;;  %s2835_s26 = sld [smem:[#allocation2 + $0x6]] }
0x1e40   :  { %2210 = vrot.lane.b32.xlu1 %v2208_v4, %s3249_s27  ;;  %s2838_s27 = sld [smem:[#allocation2 + $0x7]] }
0x1e42   :  { %v2564_v18 = vstv %s2835_s26 }
0x1e43   :  { %v2565_v29 = vmul.f32 %v2564_v18, %v2562_v17 }
0x1e46   :  { %v2740_v48 = vstv %s2838_s27 }
0x1ea6   :  { %v2656_v0 = vpop.permute.xlu1 %2655 }
0x1ea7   :  { %2837 = vmatmul.mubr.msk.f32.vlgmr.msra.gmra.mxu1 %vm174_vm2, %v2656_v0 }
0x1eaa   :  { %v783_v53 = vpop.permute.xlu1 %782 }
0x1eae   :  { %v1497_v9 = vpop.permute.xlu1 %1496 }
0x1eb2   :  { %v2211_v52 = vpop.permute.xlu1 %2210 }
0x1f67   :  { %v2725_v36 = vpop.f32.mrf.mxu1 }
0x1f68   :  { %v2729_v45 = vadd.f32 %v3889_v28, %v2725_v36 }
0x1f69   :  { %v2727_v46 = vpop.f32.mrf.mxu1 }
0x1f6a   :  { %2731 = vrot.lane.b32.xlu0 %v2729_v45, %s3244_s19 }
0x1f6e   :  { %1139 = vrot.lane.b32.xlu0 %v1137_v16, %s3247_s25 }
0x1f72   :  { %1853 = vrot.lane.b32.xlu0 %v1851_v40, %s3245_s0 }
0x1f76   :  { %2567 = vrot.lane.b32.xlu0 %v2565_v29, %s3246_s24  ;;  %s427_s24 = sld [smem:[#allocation2]] }
0x1f7c   :  { %v428_v38 = vstv %s427_s24 }
0x1fdc   :  { %v2732_v28 = vpop.permute.xlu0 %2731 }
0x1fdd   :  { %v2734_v47 = vmul.f32 %v2732_v28, %v3461_v33  ;;  %v2736_v42 = vsub.f32 %v3944_v55, %v2732_v28  ;;  %v424_v33 = vsub.f32 %v3944_v55, %v3464_v35 }
0x1fdf   :  { %v2735_v37 = vadd.f32 %v2734_v47, %v3404_v15  ;;  %v2737_v43 = vand.u32 2147483647, %v2736_v42  ;;  %v425_v51 = vand.u32 2147483647, %v424_v33 }
0x1fe0   :  { %v1140_v7 = vpop.permute.xlu0 %1139 }
0x1fe1   :  { %v2738_v49 = vmul.f32 %v3872_v19, %v2737_v43  ;;  %v2758_v50 = vsel %vm2757_vm7, %v3906_v39, %v2735_v37  ;;  %v426_v15 = vmul.f32 %v3872_v19, %v425_v51 }
0x1fe2   :  { %2759 = vst [vmem:[%s4000_s10] sm:$0xff] %v2758_v50  ;;  %s3250_s10 = smov [#allocation5]  }
0x1fe3   :  { %v2741_v5 = vmul.f32 %v2740_v48, %v2738_v49  ;;  %v429_v6 = vmul.f32 %v428_v38, %v426_v15 }
0x1fe4   :  { %v1854_v11 = vpop.permute.xlu0 %1853 }
0x1fe5   :  { %2743 = vrot.lane.b32.xlu1 %v2741_v5, %s3243_s14  ;;  %v785_v8 = vadd.f32 %v783_v53, %v429_v6  ;;  %s2781_s14 = sshll.u32 %s3250_s10, 4  ;;  %s2782_s14 = int_to_ptr.vmem [resolvable:$true] %s2781_s14 }
0x1fe6   :  { %s3216_s15 = scalar_lea.vmem %s2782_s14, 16  ;;  %s3220_s16 = scalar_lea.vmem %s2782_s14, 32 }
0x1fe7   :  { %v1142_v39 = vadd.f32 %v1140_v7, %v785_v8  ;;  %p3217_p5 = scmp.ne.s32.totalorder %s2782_s14, %s3216_s15  ;;  %p3221_p6 = scmp.lt.s32.totalorder %s2782_s14, %s2782_s14 }
0x1fe8   :  { %v2568_v57 = vpop.permute.xlu0 %2567  ;;  %p3222_p7 = scmp.lt.s32.totalorder %s3220_s16, %s3216_s15 }
0x1fe9   :  { %v1499_v10 = vadd.f32 %v1497_v9, %v1142_v39 }
0x1fea   :  { %p3223_p8 = por %p3222_p7, %p3221_p6 }
0x1feb   :  { %v1856_v54 = vadd.f32 %v1854_v11, %v1499_v10 }
0x1fec   :  { %p3224_p9 = pnand %p3223_p8, %p3217_p5 }
0x1fed   :  { %v2213_v56 = vadd.f32 %v2211_v52, %v1856_v54 }
0x1fef   :  { %v2570_v59 = vadd.f32 %v2568_v57, %v2213_v56 }
0x2057   :  { %v2744_v58 = vpop.permute.xlu1 %2743 }
0x2058   :  { %v2746_v35 = vadd.f32 %v2744_v58, %v2570_v59 }
0x205a   :  { %v2760_v55 = vsel %vm89_vm1, %v2746_v35, 0.0 }
0x205b   :  { %2761 = vadd.xlane.f32.xlu0 %v2760_v55 }
0x20e4   :  { %v2762_v19 = vpop.xlane.xlu0 %2761 }
0x20e5   :  { %v2763_v60 = vrot.slane %v2762_v19, 4 }
0x20e7   :  { %v2764_v62 = vadd.f32 %v2763_v60, %v2762_v19 }
0x20e9   :  { %v2765_v12 = vrot.slane %v2764_v62, 2 }
0x20eb   :  { %v2766_v20 = vadd.f32 %v2765_v12, %v2764_v62 }
0x20ed   :  { %v2767_v22 = vrot.slane %v2766_v20, 1 }
0x20ef   :  { %v2768_v23 = vadd.f32 %v2767_v22, %v2766_v20 }
0x20f1   :  { %3101 = vpush %v2768_v23 }
0x2122   :  { %s3102_s25 = spop %3101 }
0x2123   :  { %v2770_v24 = vstv %s3102_s25 }
0x2124   :  { %2772 = vst.msk [vmem:[#allocation5] sm:$0x1] %vm2771_vm8, %v2770_v24 }
0x2125   :  { %3227 = shalt.err (!%p3224_p9)
}
0x2126   :  { %2784 = dma.vmem_to_hbm [thread:$0]  %s2782_s14, 16, %s4001_s11, [#allocation3]  }
0x2127   :  { %3238 = dma.done.wait [#allocation3], 16  }
0x2128   :  { %3239 = vsyncadd [#allocation3], 4294967280 }
0x2129   :  { %2790 = vsyncpa [#allocation3], 1 }
0x212a   :  { %2791 = vsyncpa [#allocation4], 1 }

</bundles_post_ra>
